<compile_context>
chip_gen: v7x
topology: tpu7x:2x2x1
jax: 0.10.0
libtpu: 0.0.40
codegen_flags: <defaults>
</compile_context>

<pallas_src>
import functools

import jax
import jax.numpy as jnp
from jax.experimental import pallas as pl
from jax.experimental.pallas import tpu as pltpu


def _round_up(n, m):
    return ((n + m - 1) // m) * m


# ----------------------------------------------------------------------------
# Pallas kernel: fused 2-hidden-layer MLP with a fused (full|partial) head.
# ----------------------------------------------------------------------------
def _ensemble_decoder_kernel(
    omit_ref,            # SMEM (1,) int32 ; -1 means omit_idx is None
    x_ref,               # VMEM (TB, E)      bf16
    w0_ref, b0_ref,      # VMEM (E, H0) bf16, (1, H0) f32
    w1_ref, b1_ref,      # VMEM (H0, H1) bf16, (1, H1) f32
    wh_ref, bh_ref,      # VMEM (H1, 2*O) bf16, (1, 2*O) f32   fused [full|partial] head
    out_ref,             # VMEM (TB, 2*O) f32 ; [:, :O]=full, [:, O:]=partial
):
    omit = omit_ref[0]
    x = x_ref[...]                              # bf16 MXU operand

    def trunk(h):
        h = jnp.dot(h, w0_ref[...], preferred_element_type=jnp.float32) + b0_ref[...]
        h = jnp.maximum(h, 0.0)                  # f32 VPU work
        h = h.astype(x_ref.dtype)                # bf16 operand for next MXU push
        h = jnp.dot(h, w1_ref[...], preferred_element_type=jnp.float32) + b1_ref[...]
        h = jnp.maximum(h, 0.0)
        return h.astype(x_ref.dtype)

    h_full = trunk(x)                            # (TB, H1) bf16

    two_o = out_ref.shape[-1]
    o = two_o // 2

    @pl.when(omit < 0)
    def _():
        # omit_idx is None: partial branch is identical to the full branch,
        # so reuse h_full and do a single fused head matmul.
        out_ref[...] = (
            jnp.dot(h_full, wh_ref[...], preferred_element_type=jnp.float32)
            + bh_ref[...]
        ).astype(out_ref.dtype)

    @pl.when(omit >= 0)
    def _():
        col = jax.lax.broadcasted_iota(jnp.int32, x.shape, 1)
        x_partial = jnp.where(col == omit, jnp.zeros_like(x), x)
        h_partial = trunk(x_partial)             # (TB, H1) bf16

        tb = h_full.shape[0]
        h2 = jnp.concatenate([h_full, h_partial], axis=0)          # (2*TB, H1)
        r = (
            jnp.dot(h2, wh_ref[...], preferred_element_type=jnp.float32)
            + bh_ref[...]
        )                                                           # (2*TB, 2*O) f32
        r_full, r_partial = r[:tb], r[tb:]
        lane = jax.lax.broadcasted_iota(jnp.int32, r_full.shape, 1)
        # lanes [0, O): full head of h_full ; lanes [O, 2O): partial head of h_partial
        out_ref[...] = jnp.where(lane < o, r_full, r_partial).astype(out_ref.dtype)


# ----------------------------------------------------------------------------
# Wrapper
# ----------------------------------------------------------------------------
@functools.partial(jax.jit, static_argnames=("tile_b",))
def _forward_impl(latent_state, params, omit, *, tile_b=256):
    w0, b0 = params["w0"], params["b0"]
    w1, b1 = params["w1"], params["b1"]
    wf, bf = params["wf"], params["bf"]
    wp, bp = params["wp"], params["bp"]

    E, H0 = w0.shape
    H1 = w1.shape[1]
    O = wf.shape[1]

    x = latent_state.reshape(-1, E)
    B = x.shape[0]

    # bf16 MXU operands; biases stay f32 (f32 accumulation inside the kernel).
    x_b = x.astype(jnp.bfloat16)
    w0_b = w0.astype(jnp.bfloat16)
    w1_b = w1.astype(jnp.bfloat16)
    wh_b = jnp.concatenate([wf, wp], axis=1).astype(jnp.bfloat16)   # (H1, 2*O)
    bh_f = jnp.concatenate([bf, bp], axis=1).astype(jnp.float32)    # (1, 2*O)
    b0_f = b0.astype(jnp.float32)
    b1_f = b1.astype(jnp.float32)

    # Large, 8-aligned batch tiles; pad the batch up to a tile multiple.
    tb = min(tile_b, _round_up(B, 8))
    b_pad = _round_up(B, tb)
    if b_pad != B:
        x_b = jnp.pad(x_b, ((0, b_pad - B), (0, 0)))

    grid = (b_pad // tb,)
    grid_spec = pltpu.PrefetchScalarGridSpec(
        num_scalar_prefetch=1,
        grid=grid,
        in_specs=[
            pl.BlockSpec((tb, E), lambda i, omit_ref: (i, 0)),       # x
            pl.BlockSpec((E, H0), lambda i, omit_ref: (0, 0)),       # w0
            pl.BlockSpec((1, H0), lambda i, omit_ref: (0, 0)),       # b0
            pl.BlockSpec((H0, H1), lambda i, omit_ref: (0, 0)),      # w1
            pl.BlockSpec((1, H1), lambda i, omit_ref: (0, 0)),       # b1
            pl.BlockSpec((H1, 2 * O), lambda i, omit_ref: (0, 0)),   # fused heads W
            pl.BlockSpec((1, 2 * O), lambda i, omit_ref: (0, 0)),    # fused heads b
        ],
        out_specs=pl.BlockSpec((tb, 2 * O), lambda i, omit_ref: (i, 0)),
    )

    out = pl.pallas_call(
        _ensemble_decoder_kernel,
        out_shape=jax.ShapeDtypeStruct((b_pad, 2 * O), jnp.float32),
        grid_spec=grid_spec,
        compiler_params=pltpu.CompilerParams(
            dimension_semantics=("parallel",),
        ),
    )(omit, x_b, w0_b, b0_f, w1_b, b1_f, wh_b, bh_f)

    out = out[:B]
    # PyTorch returns shape (B, latent_dim=1, output_dim).
    return out[:, :O].reshape(B, 1, O), out[:, O:].reshape(B, 1, O)


def ensemble_task_decoder_forward(latent_state, params, omit_idx=None, *, tile_b=256):
    """Pallas implementation of EnsembleTaskDecoder.forward (latent_dim == 1)."""
    omit = jnp.asarray([-1 if omit_idx is None else int(omit_idx)], dtype=jnp.int32)
    return _forward_impl(latent_state, params, omit, tile_b=tile_b)


# ----------------------------------------------------------------------------
# Deterministic parameter initialization (mimics nn.Linear default init).
# Weights are stored as (in_features, out_features).
# ----------------------------------------------------------------------------
def init_params(key, in_dim, layers, out_dim):
    def linear(k, fan_in, fan_out):
        kw, kb = jax.random.split(k)
        bound = 1.0 / jnp.sqrt(jnp.float32(fan_in))
        w = jax.random.uniform(kw, (fan_in, fan_out), jnp.float32, -bound, bound)
        b = jax.random.uniform(kb, (1, fan_out), jnp.float32, -bound, bound)
        return w, b

    keys = jax.random.split(key, 4)
    w0, b0 = linear(keys[0], in_dim, layers[0])
    w1, b1 = linear(keys[1], layers[0], layers[1])
    wf, bf = linear(keys[2], layers[1], out_dim)
    wp, bp = linear(keys[3], layers[1], out_dim)
    return dict(w0=w0, b0=b0, w1=w1, b1=b1, wf=wf, bf=bf, wp=wp, bp=bp)


# ----------------------------------------------------------------------------
# Pure-JAX reference mirroring the kernel's bf16-operand / f32-accumulate math
# (and the PyTorch forward semantics).
# ----------------------------------------------------------------------------
def reference_forward(latent_state, params, omit_idx=None):
    E = params["w0"].shape[0]
    O = params["wf"].shape[1]
    hi = jax.lax.Precision.HIGHEST

    def bf16(v):
        return v.astype(jnp.bfloat16).astype(jnp.float32)

    x = bf16(latent_state.reshape(-1, E))
    xp = x if omit_idx is None else x.at[:, omit_idx].set(0.0)

    w0, w1 = bf16(params["w0"]), bf16(params["w1"])
    wf, wp = bf16(params["wf"]), bf16(params["wp"])

    def trunk(h):
        h = jnp.maximum(jnp.dot(h, w0, precision=hi) + params["b0"], 0.0)
        h = bf16(h)
        h = jnp.maximum(jnp.dot(h, w1, precision=hi) + params["b1"], 0.0)
        return bf16(h)

    of = jnp.dot(trunk(x), wf, precision=hi) + params["bf"]
    op = jnp.dot(trunk(xp), wp, precision=hi) + params["bp"]
    return of.reshape(-1, 1, O), op.reshape(-1, 1, O)


if __name__ == "__main__":
    # Module configuration (latent_dim must be 1 for the PyTorch forward to run).
    latent_dim = 1
    ensemble_size = 32
    layers = [64, 64]
    pred_type = "task_description"
    task_dim = 16
    num_tasks = 8
    output_dim = task_dim if pred_type == "task_description" else num_tasks

    B = 512                      # -> 2 parallel grid steps of 256 rows each
    in_dim = latent_dim * ensemble_size

    key = jax.random.PRNGKey(0)
    k_params, k_x = jax.random.split(key)
    params = init_params(k_params, in_dim, layers, output_dim)
    latent_state = jax.random.normal(k_x, (B, in_dim), jnp.float32)

    # Run once with omit_idx set and once with omit_idx=None (same compiled kernel).
    out_full, out_partial = ensemble_task_decoder_forward(latent_state, params, omit_idx=3)
    jax.block_until_ready((out_full, out_partial))
    out_full_n, out_partial_n = ensemble_task_decoder_forward(latent_state, params, omit_idx=None)
    jax.block_until_ready((out_full_n, out_partial_n))

    # Check against the pure-JAX reference (bf16-operand emulation -> tight tol).
    ref_full, ref_partial = reference_forward(latent_state, params, omit_idx=3)
    ref_full_n, ref_partial_n = reference_forward(latent_state, params, omit_idx=None)
    assert jnp.allclose(out_full, ref_full, atol=1e-3, rtol=1e-3)
    assert jnp.allclose(out_partial, ref_partial, atol=1e-3, rtol=1e-3)
    assert jnp.allclose(out_full_n, ref_full_n, atol=1e-3, rtol=1e-3)
    assert jnp.allclose(out_partial_n, ref_partial_n, atol=1e-3, rtol=1e-3)

    print("KERNEL_OK")
</pallas_src>

<mosaic_0001>
module attributes {stable_mosaic.version = 11 : i64} {
  func.func @_ensemble_decoder_kernel(%arg0: i32, %arg1: memref<1xi32, #tpu.memory_space<smem>>, %arg2: memref<256x32xbf16, #tpu.memory_space<vmem>>, %arg3: memref<32x64xbf16, #tpu.memory_space<vmem>>, %arg4: memref<1x64xf32, #tpu.memory_space<vmem>>, %arg5: memref<64x64xbf16, #tpu.memory_space<vmem>>, %arg6: memref<1x64xf32, #tpu.memory_space<vmem>>, %arg7: memref<64x32xbf16, #tpu.memory_space<vmem>>, %arg8: memref<1x32xf32, #tpu.memory_space<vmem>>, %arg9: memref<256x32xf32, #tpu.memory_space<vmem>>) attributes {dimension_semantics = [#tpu.dimension_semantics<parallel>], iteration_bounds = array<i64: 2>, scalar_prefetch = 1 : i64, scratch_operands = 0 : i64, tpu.core_type = #tpu.core_type<tc>, window_params = [{transform_indices = @transform_0, window_bounds = array<i64: 256, 32>}, {pipeline_mode = #tpu.pipeline_mode<synchronous>, transform_indices = @transform_1, window_bounds = array<i64: 32, 64>}, {pipeline_mode = #tpu.pipeline_mode<synchronous>, transform_indices = @transform_2, window_bounds = array<i64: 1, 64>}, {pipeline_mode = #tpu.pipeline_mode<synchronous>, transform_indices = @transform_3, window_bounds = array<i64: 64, 64>}, {pipeline_mode = #tpu.pipeline_mode<synchronous>, transform_indices = @transform_4, window_bounds = array<i64: 1, 64>}, {pipeline_mode = #tpu.pipeline_mode<synchronous>, transform_indices = @transform_5, window_bounds = array<i64: 64, 32>}, {pipeline_mode = #tpu.pipeline_mode<synchronous>, transform_indices = @transform_6, window_bounds = array<i64: 1, 32>}, {transform_indices = @transform_7, window_bounds = array<i64: 256, 32>}]} {
    %c0 = arith.constant 0 : index
    %0 = memref.load %arg1[%c0] : memref<1xi32, #tpu.memory_space<smem>>
    %c0_0 = arith.constant 0 : index
    %c0_1 = arith.constant 0 : index
    %1 = vector.load %arg2[%c0_0, %c0_1] : memref<256x32xbf16, #tpu.memory_space<vmem>>, vector<256x32xbf16>
    %c0_2 = arith.constant 0 : index
    %c0_3 = arith.constant 0 : index
    %2 = vector.load %arg3[%c0_2, %c0_3] : memref<32x64xbf16, #tpu.memory_space<vmem>>, vector<32x64xbf16>
    %cst = arith.constant dense<0.000000e+00> : vector<256x64xf32>
    %3 = tpu.matmul %1, %2, %cst {dimension_numbers = #tpu.dot_dimension_numbers<[1], [0], [0], [1], [0, 0, 1, 1], [], []>} : vector<256x32xbf16>, vector<32x64xbf16>, vector<256x64xf32> -> vector<256x64xf32>
    %c0_4 = arith.constant 0 : index
    %c0_5 = arith.constant 0 : index
    %4 = vector.load %arg4[%c0_4, %c0_5] : memref<1x64xf32, #tpu.memory_space<vmem>>, vector<1x64xf32>
    %5 = vector.broadcast %4 : vector<1x64xf32> to vector<256x64xf32>
    %6 = arith.addf %3, %5 : vector<256x64xf32>
    %cst_6 = arith.constant 0.000000e+00 : f32
    %7 = vector.broadcast %cst_6 : f32 to vector<256x64xf32>
    %8 = arith.maximumf %6, %7 : vector<256x64xf32>
    %9 = arith.truncf %8 : vector<256x64xf32> to vector<256x64xbf16>
    %c0_7 = arith.constant 0 : index
    %c0_8 = arith.constant 0 : index
    %10 = vector.load %arg5[%c0_7, %c0_8] : memref<64x64xbf16, #tpu.memory_space<vmem>>, vector<64x64xbf16>
    %cst_9 = arith.constant dense<0.000000e+00> : vector<256x64xf32>
    %11 = tpu.matmul %9, %10, %cst_9 {dimension_numbers = #tpu.dot_dimension_numbers<[1], [0], [0], [1], [0, 0, 1, 1], [], []>} : vector<256x64xbf16>, vector<64x64xbf16>, vector<256x64xf32> -> vector<256x64xf32>
    %c0_10 = arith.constant 0 : index
    %c0_11 = arith.constant 0 : index
    %12 = vector.load %arg6[%c0_10, %c0_11] : memref<1x64xf32, #tpu.memory_space<vmem>>, vector<1x64xf32>
    %13 = vector.broadcast %12 : vector<1x64xf32> to vector<256x64xf32>
    %14 = arith.addf %11, %13 : vector<256x64xf32>
    %cst_12 = arith.constant 0.000000e+00 : f32
    %15 = vector.broadcast %cst_12 : f32 to vector<256x64xf32>
    %16 = arith.maximumf %14, %15 : vector<256x64xf32>
    %17 = arith.truncf %16 : vector<256x64xf32> to vector<256x64xbf16>
    %c0_i32 = arith.constant 0 : i32
    %18 = arith.cmpi slt, %0, %c0_i32 : i32
    %19 = arith.extui %18 : i1 to i32
    %c0_i32_13 = arith.constant 0 : i32
    %20 = arith.cmpi ne, %19, %c0_i32_13 : i32
    scf.if %20 {
      %c0_16 = arith.constant 0 : index
      %c0_17 = arith.constant 0 : index
      %24 = vector.load %arg7[%c0_16, %c0_17] : memref<64x32xbf16, #tpu.memory_space<vmem>>, vector<64x32xbf16>
      %cst_18 = arith.constant dense<0.000000e+00> : vector<256x32xf32>
      %25 = tpu.matmul %17, %24, %cst_18 {dimension_numbers = #tpu.dot_dimension_numbers<[1], [0], [0], [1], [0, 0, 1, 1], [], []>} : vector<256x64xbf16>, vector<64x32xbf16>, vector<256x32xf32> -> vector<256x32xf32>
      %c0_19 = arith.constant 0 : index
      %c0_20 = arith.constant 0 : index
      %26 = vector.load %arg8[%c0_19, %c0_20] : memref<1x32xf32, #tpu.memory_space<vmem>>, vector<1x32xf32>
      %27 = vector.broadcast %26 : vector<1x32xf32> to vector<256x32xf32>
      %28 = arith.addf %25, %27 : vector<256x32xf32>
      %c0_21 = arith.constant 0 : index
      %c0_22 = arith.constant 0 : index
      %29 = vector.load %arg9[%c0_21, %c0_22] : memref<256x32xf32, #tpu.memory_space<vmem>>, vector<256x32xf32>
      tpu.vector_store %arg9[%c0_21, %c0_22], %28 {strides = array<i32>} : memref<256x32xf32, #tpu.memory_space<vmem>>, vector<256x32xf32>,
    } else {
    }
    %c0_i32_14 = arith.constant 0 : i32
    %21 = arith.cmpi sge, %0, %c0_i32_14 : i32
    %22 = arith.extui %21 : i1 to i32
    %c0_i32_15 = arith.constant 0 : i32
    %23 = arith.cmpi ne, %22, %c0_i32_15 : i32
    scf.if %23 {
      %24 = tpu.iota {dimensions = array<i32: 1>} : vector<256x32xi32>
      %25 = vector.broadcast %0 : i32 to vector<256x32xi32>
      %26 = arith.cmpi eq, %24, %25 : vector<256x32xi32>
      %cst_16 = arith.constant 0.000000e+00 : bf16
      %27 = vector.broadcast %cst_16 : bf16 to vector<256x32xbf16>
      %28 = arith.select %26, %27, %1 : vector<256x32xi1>, vector<256x32xbf16>
      %c0_17 = arith.constant 0 : index
      %c0_18 = arith.constant 0 : index
      %29 = vector.load %arg3[%c0_17, %c0_18] : memref<32x64xbf16, #tpu.memory_space<vmem>>, vector<32x64xbf16>
      %cst_19 = arith.constant dense<0.000000e+00> : vector<256x64xf32>
      %30 = tpu.matmul %28, %29, %cst_19 {dimension_numbers = #tpu.dot_dimension_numbers<[1], [0], [0], [1], [0, 0, 1, 1], [], []>} : vector<256x32xbf16>, vector<32x64xbf16>, vector<256x64xf32> -> vector<256x64xf32>
      %c0_20 = arith.constant 0 : index
      %c0_21 = arith.constant 0 : index
      %31 = vector.load %arg4[%c0_20, %c0_21] : memref<1x64xf32, #tpu.memory_space<vmem>>, vector<1x64xf32>
      %32 = vector.broadcast %31 : vector<1x64xf32> to vector<256x64xf32>
      %33 = arith.addf %30, %32 : vector<256x64xf32>
      %cst_22 = arith.constant 0.000000e+00 : f32
      %34 = vector.broadcast %cst_22 : f32 to vector<256x64xf32>
      %35 = arith.maximumf %33, %34 : vector<256x64xf32>
      %36 = arith.truncf %35 : vector<256x64xf32> to vector<256x64xbf16>
      %c0_23 = arith.constant 0 : index
      %c0_24 = arith.constant 0 : index
      %37 = vector.load %arg5[%c0_23, %c0_24] : memref<64x64xbf16, #tpu.memory_space<vmem>>, vector<64x64xbf16>
      %cst_25 = arith.constant dense<0.000000e+00> : vector<256x64xf32>
      %38 = tpu.matmul %36, %37, %cst_25 {dimension_numbers = #tpu.dot_dimension_numbers<[1], [0], [0], [1], [0, 0, 1, 1], [], []>} : vector<256x64xbf16>, vector<64x64xbf16>, vector<256x64xf32> -> vector<256x64xf32>
      %c0_26 = arith.constant 0 : index
      %c0_27 = arith.constant 0 : index
      %39 = vector.load %arg6[%c0_26, %c0_27] : memref<1x64xf32, #tpu.memory_space<vmem>>, vector<1x64xf32>
      %40 = vector.broadcast %39 : vector<1x64xf32> to vector<256x64xf32>
      %41 = arith.addf %38, %40 : vector<256x64xf32>
      %cst_28 = arith.constant 0.000000e+00 : f32
      %42 = vector.broadcast %cst_28 : f32 to vector<256x64xf32>
      %43 = arith.maximumf %41, %42 : vector<256x64xf32>
      %44 = arith.truncf %43 : vector<256x64xf32> to vector<256x64xbf16>
      %45 = tpu.concatenate %17, %44 in 0 : vector<256x64xbf16>, vector<256x64xbf16> -> vector<512x64xbf16>
      %c0_29 = arith.constant 0 : index
      %c0_30 = arith.constant 0 : index
      %46 = vector.load %arg7[%c0_29, %c0_30] : memref<64x32xbf16, #tpu.memory_space<vmem>>, vector<64x32xbf16>
      %cst_31 = arith.constant dense<0.000000e+00> : vector<512x32xf32>
      %47 = tpu.matmul %45, %46, %cst_31 {dimension_numbers = #tpu.dot_dimension_numbers<[1], [0], [0], [1], [0, 0, 1, 1], [], []>} : vector<512x64xbf16>, vector<64x32xbf16>, vector<512x32xf32> -> vector<512x32xf32>
      %c0_32 = arith.constant 0 : index
      %c0_33 = arith.constant 0 : index
      %48 = vector.load %arg8[%c0_32, %c0_33] : memref<1x32xf32, #tpu.memory_space<vmem>>, vector<1x32xf32>
      %49 = vector.broadcast %48 : vector<1x32xf32> to vector<512x32xf32>
      %50 = arith.addf %47, %49 : vector<512x32xf32>
      %51 = vector.extract_strided_slice %50 {offsets = [0, 0], sizes = [256, 32], strides = [1, 1]} : vector<512x32xf32> to vector<256x32xf32>
      %52 = vector.extract_strided_slice %50 {offsets = [256, 0], sizes = [256, 32], strides = [1, 1]} : vector<512x32xf32> to vector<256x32xf32>
      %53 = tpu.iota {dimensions = array<i32: 1>} : vector<256x32xi32>
      %c16_i32 = arith.constant 16 : i32
      %54 = vector.broadcast %c16_i32 : i32 to vector<256x32xi32>
      %55 = arith.cmpi slt, %53, %54 : vector<256x32xi32>
      %56 = arith.select %55, %51, %52 : vector<256x32xi1>, vector<256x32xf32>
      %c0_34 = arith.constant 0 : index
      %c0_35 = arith.constant 0 : index
      %57 = vector.load %arg9[%c0_34, %c0_35] : memref<256x32xf32, #tpu.memory_space<vmem>>, vector<256x32xf32>
      tpu.vector_store %arg9[%c0_34, %c0_35], %56 {strides = array<i32>} : memref<256x32xf32, #tpu.memory_space<vmem>>, vector<256x32xf32>,
    } else {
    }
    return
  }
  func.func @transform_0(%arg0: i32, %arg1: memref<1xi32, #tpu.memory_space<smem>>) -> (i32, i32) {
    %c0_i32 = arith.constant 0 : i32
    %c0_i32_0 = arith.constant 0 : i32
    return %arg0, %c0_i32 : i32, i32
  }
  func.func @transform_1(%arg0: i32, %arg1: memref<1xi32, #tpu.memory_space<smem>>) -> (i32, i32) {
    %c0_i32 = arith.constant 0 : i32
    %c0_i32_0 = arith.constant 0 : i32
    %c0_i32_1 = arith.constant 0 : i32
    return %c0_i32, %c0_i32_0 : i32, i32
  }
  func.func @transform_2(%arg0: i32, %arg1: memref<1xi32, #tpu.memory_space<smem>>) -> (i32, i32) {
    %c0_i32 = arith.constant 0 : i32
    %c0_i32_0 = arith.constant 0 : i32
    %c0_i32_1 = arith.constant 0 : i32
    return %c0_i32, %c0_i32_0 : i32, i32
  }
  func.func @transform_3(%arg0: i32, %arg1: memref<1xi32, #tpu.memory_space<smem>>) -> (i32, i32) {
    %c0_i32 = arith.constant 0 : i32
    %c0_i32_0 = arith.constant 0 : i32
    %c0_i32_1 = arith.constant 0 : i32
    return %c0_i32, %c0_i32_0 : i32, i32
  }
  func.func @transform_4(%arg0: i32, %arg1: memref<1xi32, #tpu.memory_space<smem>>) -> (i32, i32) {
    %c0_i32 = arith.constant 0 : i32
    %c0_i32_0 = arith.constant 0 : i32
    %c0_i32_1 = arith.constant 0 : i32
    return %c0_i32, %c0_i32_0 : i32, i32
  }
  func.func @transform_5(%arg0: i32, %arg1: memref<1xi32, #tpu.memory_space<smem>>) -> (i32, i32) {
    %c0_i32 = arith.constant 0 : i32
    %c0_i32_0 = arith.constant 0 : i32
    %c0_i32_1 = arith.constant 0 : i32
    return %c0_i32, %c0_i32_0 : i32, i32
  }
  func.func @transform_6(%arg0: i32, %arg1: memref<1xi32, #tpu.memory_space<smem>>) -> (i32, i32) {
    %c0_i32 = arith.constant 0 : i32
    %c0_i32_0 = arith.constant 0 : i32
    %c0_i32_1 = arith.constant 0 : i32
    return %c0_i32, %c0_i32_0 : i32, i32
  }
  func.func @transform_7(%arg0: i32, %arg1: memref<1xi32, #tpu.memory_space<smem>>) -> (i32, i32) {
    %c0_i32 = arith.constant 0 : i32
    %c0_i32_0 = arith.constant 0 : i32
    return %arg0, %c0_i32 : i32, i32
  }
}

</mosaic_0001>

<bundles_post_ra>
// kernel: _forward_impl.1
= control target key start
LH: loop header
LB: loop body
LE: loop exit
PB: predicated region body
PF: predicated region fallthrough
CT: control target
= control target key end

     0   :  { %s3189_s29 = smov 0   ;;  %s4225_s0 = inlined_call_operand.<no memory space> [shape: s32[1], index: 0, kind: input, shape index: {}]   ;;  %s4226_s1 = inlined_call_operand.vmem [shape: bf16[512,32], index: 1, kind: input, shape index: {}]   ;;  %s4227_s2 = inlined_call_operand.vmem [shape: bf16[32,64], index: 2, kind: input, shape index: {}]   ;;  %s4228_s3 = inlined_call_operand.vmem [shape: f32[1,64], index: 3, kind: input, shape index: {}]   ;;  %s4229_s4 = inlined_call_operand.vmem [shape: bf16[64,64], index: 4, kind: input, shape index: {}]   ;;  %s4230_s5 = inlined_call_operand.vmem [shape: f32[1,64], index: 5, kind: input, shape index: {}]   ;;  %s4231_s6 = inlined_call_operand.vmem [shape: bf16[64,32], index: 6, kind: input, shape index: {}]   ;;  %s4232_s7 = inlined_call_operand.vmem [shape: f32[1,32], index: 7, kind: input, shape index: {}]   ;;  %s4233_s8 = inlined_call_operand.vmem [shape: f32[512,32], index: 8, kind: output, shape index: {}]  }
   0x1   :  { %13 = sst [smem:[#allocation3]] %s4225_s0 }
   0x2 LB: > { %s2502_s30 = sadd.s32 4294967295, %s3139_s29   ;;  %p2506_p0 = scmp.ge.s32.totalorder %s3139_s29, 1  ;;  %s3139_s29 = sphi %s3189_s29, %s19_s29  }
   0x3   : > { %p240_p1 = scmp.lt.s32.totalorder %s3139_s29, 3 }
   0x5   : > { %p241_p2 = pnand %p2506_p0, %p240_p1 }
   0x6   : > { %s3197_s9 = sld [smem:[#allocation3]] (!%p241_p2)  ;;  %v3097_v0 = vld [vmem:[%s4227_s2] sm:$0xff] (!%p241_p2)   ;;  %s2507_s0 = sshll.u32 (!%p241_p2), %s2502_s30, 5  ;;  %v3098_v1 = vld [vmem:[%s4227_s2 + $0x8] sm:$0xff] (!%p241_p2)   ;;  %vm421_vm0 = vcmask (!%p241_p2), 261120   ;;  %v3117_v52 = vld [vmem:[%s4229_s4 + $0x10] sm:$0xff] (!%p241_p2)  }
   0x7   : > { %244 = sbr.rel (%p241_p2) target bundleno = 1499 (0x5db), region = 48  ;;  %p273_p3 = scmp.lt.s32.totalorder (!%p241_p2), %s2507_s0, 63  ;;  %v3115_v2 = vld [vmem:[%s4229_s4] sm:$0xff] (!%p241_p2)   ;;  %2817 = vmatprep.subr.bf16.mxu0 (!%p241_p2), %v3097_v0  ;;  %v3116_v3 = vld [vmem:[%s4229_s4 + $0x8] sm:$0xff] (!%p241_p2)   ;;  %v3118_v53 = vld [vmem:[%s4229_s4 + $0x18] sm:$0xff] (!%p241_p2)   ;;  %vm718_vm1 = vcmask (!%p241_p2), 523264  }
   0x8   : > { %2818 = vmatpush3.bf16.msra.mxu0 (!%p241_p2), %v3097_v0  ;;  %2853 = vmatprep.subr.bf16.mxu1 (!%p241_p2), %v3115_v2  ;;  %v3374_v54 = vld [vmem:[%s4228_s3] ss:$0 sm:$0xff] (!%p241_p2) }
   0x9   : > { %2819 = vmatprep.subr.bf16.mxu0 (!%p241_p2), %v3098_v1  ;;  %2854 = vmatpush3.bf16.msra.mxu1 (!%p241_p2), %v3115_v2 }
   0xa   : > { %2855 = vmatprep.subr.bf16.mxu1 (!%p241_p2), %v3116_v3 }
   0xc   : > { %2820 = vmatpush3.bf16.msra.mxu0 (!%p241_p2), %v3098_v1  ;;  %p2567_p4 = scmp.ge.s32.totalorder (!%p241_p2), %s3197_s9, 0 }
   0xd   : > { %2856 = vmatpush3.bf16.msra.mxu1 (!%p241_p2), %v3116_v3 }
   0xe   : > { %s4237_s0 = smov (!%p273_p3, %s2507_s0), 63  ;;  %2857 = vmatprep.subr.bf16.mxu1 %v3117_v52 }
   0xf   : > { %s2508_s18 = sshll.u32 %s4237_s0, 2  ;;  %s2510_s19 = sshll.u32 %s4237_s0, 3 }
  0x10   : > { %s3214_s22 = scalar_lea.vmem %s4226_s1, %s2508_s18  ;;  %s3219_s25 = scalar_lea.vmem %s4233_s8, %s2510_s19 }
  0x11   : > { %v3222_v4 = vld [vmem:[%s3214_s22] sm:$0xf]  ;;  %v3225_v5 = vld [vmem:[%s3214_s22 + $0x4] sm:$0xf]  ;;  %v3228_v6 = vld [vmem:[%s3214_s22 + $0x8] sm:$0xf]  ;;  %2858 = vmatpush3.bf16.msra.mxu1 %v3117_v52 }
  0x12   : > { %v2512_v7 = vcombine.low %v3222_v4, %v3225_v5  ;;  %v3233_v8 = vld [vmem:[%s3214_s22 + $0xc] sm:$0xf]  ;;  %v3236_v9 = vld [vmem:[%s3214_s22 + $0x10] sm:$0xf]  ;;  %v3239_v10 = vld [vmem:[%s3214_s22 + $0x14] sm:$0xf]  ;;  %2859 = vmatprep.subr.bf16.mxu1 %v3118_v53 }
  0x13   : > { %v2513_v11 = vcombine.low %v3228_v6, %v3233_v8  ;;  %v2514_v12 = vcombine.low %v3236_v9, %v3239_v10  ;;  %v3249_v13 = vld [vmem:[%s3214_s22 + $0x18] sm:$0xf]  ;;  %v3252_v14 = vld [vmem:[%s3214_s22 + $0x1c] sm:$0xf]  ;;  %v3255_v15 = vld [vmem:[%s3214_s22 + $0x20] sm:$0xf] }
  0x14   : > { %2821 = vmatprep.mubr.msk.bf16.mxu0 %vm421_vm0, %v2512_v7  ;;  %v3258_v16 = vld [vmem:[%s3214_s22 + $0x24] sm:$0xf]  ;;  %v2515_v17 = vcombine.low %v3249_v13, %v3252_v14  ;;  %v3267_v19 = vld [vmem:[%s3214_s22 + $0x28] sm:$0xf]  ;;  %v3270_v20 = vld [vmem:[%s3214_s22 + $0x2c] sm:$0xf] }
  0x15   : > { %2822 = vmatmul.mubr.msk.bf16.vlgmr.msra.gmra.mrb[0].mxu0 %vm421_vm0, %v2513_v11  ;;  %v2516_v18 = vcombine.low %v3255_v15, %v3258_v16  ;;  %v3273_v21 = vld [vmem:[%s3214_s22 + $0x30] sm:$0xf]  ;;  %v3276_v22 = vld [vmem:[%s3214_s22 + $0x34] sm:$0xf]  ;;  %v2517_v23 = vcombine.low %v3267_v19, %v3270_v20  ;;  %v3285_v25 = vld [vmem:[%s3214_s22 + $0x38] sm:$0xf]  ;;  %2860 = vmatpush3.bf16.msra.mxu1 %v3118_v53 }
  0x16   : > { %2825 = vmatprep.mubr.msk.bf16.mxu0 %vm421_vm0, %v2514_v12  ;;  %v2518_v24 = vcombine.low %v3273_v21, %v3276_v22  ;;  %v3288_v26 = vld [vmem:[%s3214_s22 + $0x3c] sm:$0xf]  ;;  %v3291_v27 = vld [vmem:[%s3214_s22 + $0x40] sm:$0xf]  ;;  %v3294_v28 = vld [vmem:[%s3214_s22 + $0x44] sm:$0xf] }
  0x17   : > { %v2519_v29 = vcombine.low %v3285_v25, %v3288_v26  ;;  %v2520_v30 = vcombine.low %v3291_v27, %v3294_v28  ;;  %v3303_v31 = vld [vmem:[%s3214_s22 + $0x48] sm:$0xf]  ;;  %v3306_v32 = vld [vmem:[%s3214_s22 + $0x4c] sm:$0xf]  ;;  %v3309_v33 = vld [vmem:[%s3214_s22 + $0x50] sm:$0xf] }
  0x18   : > { %v3312_v34 = vld [vmem:[%s3214_s22 + $0x54] sm:$0xf]  ;;  %v2521_v35 = vcombine.low %v3303_v31, %v3306_v32  ;;  %v3321_v37 = vld [vmem:[%s3214_s22 + $0x58] sm:$0xf]  ;;  %v3324_v38 = vld [vmem:[%s3214_s22 + $0x5c] sm:$0xf] }
  0x19   : > { %v2522_v36 = vcombine.low %v3309_v33, %v3312_v34  ;;  %v3327_v39 = vld [vmem:[%s3214_s22 + $0x60] sm:$0xf]  ;;  %v3330_v40 = vld [vmem:[%s3214_s22 + $0x64] sm:$0xf]  ;;  %v2523_v41 = vcombine.low %v3321_v37, %v3324_v38  ;;  %v3339_v43 = vld [vmem:[%s3214_s22 + $0x68] sm:$0xf] }
  0x1a   : > { %v2524_v42 = vcombine.low %v3327_v39, %v3330_v40  ;;  %v3342_v44 = vld [vmem:[%s3214_s22 + $0x6c] sm:$0xf]  ;;  %v3345_v45 = vld [vmem:[%s3214_s22 + $0x70] sm:$0xf]  ;;  %v3348_v46 = vld [vmem:[%s3214_s22 + $0x74] sm:$0xf] }
  0x1b   : > { %v2525_v47 = vcombine.low %v3339_v43, %v3342_v44  ;;  %v2526_v48 = vcombine.low %v3345_v45, %v3348_v46  ;;  %v3357_v49 = vld [vmem:[%s3214_s22 + $0x78] sm:$0xf]  ;;  %v3360_v50 = vld [vmem:[%s3214_s22 + $0x7c] sm:$0xf] }
  0x1c   : > { %v2527_v51 = vcombine.low %v3357_v49, %v3360_v50 }
  0x1d   : > { %2826 = vmatmul.mubr.msk.bf16.gmra.mrb[4].mxu0 %vm421_vm0, %v2515_v17 }
  0x1e   : > { %2829 = vmatprep.mubr.msk.bf16.mxu0 %vm421_vm0, %v2516_v18 }
  0x25   : > { %2830 = vmatmul.mubr.msk.bf16.gmra.mrb[8].mxu0 %vm421_vm0, %v2517_v23 }
  0x26   : > { %2833 = vmatprep.mubr.msk.bf16.mxu0 %vm421_vm0, %v2518_v24 }
  0x2d   : > { %2834 = vmatmul.mubr.msk.bf16.gmra.mrb[12].mxu0 %vm421_vm0, %v2519_v29 }
  0x2e   : > { %2837 = vmatprep.mubr.msk.bf16.mxu0 %vm421_vm0, %v2520_v30 }
  0x35   : > { %2838 = vmatmul.mubr.msk.bf16.gmra.mrb[16].mxu0 %vm421_vm0, %v2521_v35 }
  0x36   : > { %2841 = vmatprep.mubr.msk.bf16.mxu0 %vm421_vm0, %v2522_v36 }
  0x3d   : > { %2842 = vmatmul.mubr.msk.bf16.gmra.mrb[20].mxu0 %vm421_vm0, %v2523_v41 }
  0x3e   : > { %2845 = vmatprep.mubr.msk.bf16.mxu0 %vm421_vm0, %v2524_v42 }
  0x45   : > { %2846 = vmatmul.mubr.msk.bf16.gmra.mrb[24].mxu0 %vm421_vm0, %v2525_v47 }
  0x46   : > { %2849 = vmatprep.mubr.msk.bf16.mxu0 %vm421_vm0, %v2526_v48 }
  0x4d   : > { %2850 = vmatmul.mubr.msk.bf16.gmra.mrb[28].mxu0 %vm421_vm0, %v2527_v51 }
  0xe8   : > { %v2823_v55 = vpop.f32.mrb[0].mxu0 }
  0xe9   : > { %v513_v56 = vadd.f32 %v2823_v55, %v3374_v54  ;;  %v504_v57 = vpop.f32.mrb[1].mxu0 }
  0xea   : > { %v505_v58 = vadd.f32 %v3374_v54, %v504_v57  ;;  %v2824_v59 = vpop.f32.mrb[2].mxu0 }
  0xeb   : > { %v516_v60 = vadd.f32 %v2824_v59, %v3374_v54  ;;  %v507_v61 = vpop.f32.mrb[3].mxu0  ;;  %v633_v63 = vmax.f32 %v513_v56, 0.0 }
  0xec   : > { %v508_v62 = vadd.f32 %v3374_v54, %v507_v61  ;;  %v631_v1 = vmax.f32 %v505_v58, 0.0 }
  0xed   : > { %v634_v0 = vmax.f32 %v516_v60, 0.0 }
  0xee   : > { %v632_v2 = vmax.f32 %v508_v62, 0.0 }
  0xef   : > { %v664_v3 = vpack.c.bf16 %v634_v0, %v633_v63 }
  0xf0   : > { %v2827_v7 = vpop.f32.mrb[4].mxu0  ;;  %v663_v11 = vpack.c.bf16 %v632_v2, %v631_v1 }
  0xf1   : > { %v529_v12 = vadd.f32 %v2827_v7, %v3374_v54  ;;  %v520_v17 = vpop.f32.mrb[5].mxu0 }
  0xf2   : > { %v521_v18 = vadd.f32 %v3374_v54, %v520_v17  ;;  %v2828_v23 = vpop.f32.mrb[6].mxu0  ;;  %2861 = vmatprep.mubr.msk.bf16.mxu1 %vm718_vm1, %v663_v11 }
  0xf3   : > { %v532_v24 = vadd.f32 %v2828_v23, %v3374_v54  ;;  %v523_v29 = vpop.f32.mrb[7].mxu0  ;;  %2862 = vmatmul.mubr.msk.bf16.vlgmr.msra.gmra.mrb[0].mxu1 %vm718_vm1, %v664_v3  ;;  %v637_v35 = vmax.f32 %v529_v12, 0.0 }
  0xf4   : > { %v524_v30 = vadd.f32 %v3374_v54, %v523_v29  ;;  %v635_v41 = vmax.f32 %v521_v18, 0.0 }
  0xf5   : > { %v638_v36 = vmax.f32 %v532_v24, 0.0 }
  0xf6   : > { %v636_v42 = vmax.f32 %v524_v30, 0.0 }
  0xf7   : > { %v666_v47 = vpack.c.bf16 %v638_v36, %v637_v35 }
  0xf8   : > { %v665_v48 = vpack.c.bf16 %v636_v42, %v635_v41  ;;  %v2831_v51 = vpop.f32.mrb[8].mxu0 }
  0xf9   : > { %v545_v52 = vadd.f32 %v2831_v51, %v3374_v54  ;;  %v536_v53 = vpop.f32.mrb[9].mxu0 }
  0xfa   : > { %v537_v55 = vadd.f32 %v3374_v54, %v536_v53  ;;  %v2832_v56 = vpop.f32.mrb[10].mxu0  ;;  %2865 = vmatprep.mubr.msk.bf16.mxu1 %vm718_vm1, %v665_v48 }
  0xfb   : > { %v548_v57 = vadd.f32 %v2832_v56, %v3374_v54  ;;  %v539_v58 = vpop.f32.mrb[11].mxu0  ;;  %2866 = vmatmul.mubr.msk.bf16.gmra.mrb[4].mxu1 %vm718_vm1, %v666_v47  ;;  %v641_v60 = vmax.f32 %v545_v52, 0.0 }
  0xfc   : > { %v540_v59 = vadd.f32 %v3374_v54, %v539_v58  ;;  %v639_v62 = vmax.f32 %v537_v55, 0.0 }
  0xfd   : > { %v642_v61 = vmax.f32 %v548_v57, 0.0 }
  0xfe   : > { %v640_v63 = vmax.f32 %v540_v59, 0.0 }
  0xff   : > { %v668_v0 = vpack.c.bf16 %v642_v61, %v641_v60 }
 0x100   : > { %v667_v1 = vpack.c.bf16 %v640_v63, %v639_v62  ;;  %v2835_v2 = vpop.f32.mrb[12].mxu0 }
 0x101   : > { %v561_v3 = vadd.f32 %v2835_v2, %v3374_v54  ;;  %v552_v7 = vpop.f32.mrb[13].mxu0 }
 0x102   : > { %v553_v11 = vadd.f32 %v3374_v54, %v552_v7  ;;  %v2836_v12 = vpop.f32.mrb[14].mxu0  ;;  %2869 = vmatprep.mubr.msk.bf16.mxu1 %vm718_vm1, %v667_v1 }
 0x103   : > { %v564_v17 = vadd.f32 %v2836_v12, %v3374_v54  ;;  %v555_v18 = vpop.f32.mrb[15].mxu0  ;;  %2870 = vmatmul.mubr.msk.bf16.gmra.mrb[8].mxu1 %vm718_vm1, %v668_v0  ;;  %v645_v24 = vmax.f32 %v561_v3, 0.0 }
 0x104   : > { %v556_v23 = vadd.f32 %v3374_v54, %v555_v18  ;;  %v643_v30 = vmax.f32 %v553_v11, 0.0 }
 0x105   : > { %v646_v29 = vmax.f32 %v564_v17, 0.0 }
 0x106   : > { %v644_v35 = vmax.f32 %v556_v23, 0.0 }
 0x107   : > { %v670_v36 = vpack.c.bf16 %v646_v29, %v645_v24 }
 0x108   : > { %v669_v41 = vpack.c.bf16 %v644_v35, %v643_v30  ;;  %v2839_v42 = vpop.f32.mrb[16].mxu0 }
 0x109   : > { %v577_v47 = vadd.f32 %v2839_v42, %v3374_v54  ;;  %v568_v48 = vpop.f32.mrb[17].mxu0 }
 0x10a   : > { %v569_v51 = vadd.f32 %v3374_v54, %v568_v48  ;;  %v2840_v52 = vpop.f32.mrb[18].mxu0  ;;  %2873 = vmatprep.mubr.msk.bf16.mxu1 %vm718_vm1, %v669_v41 }
 0x10b   : > { %v580_v53 = vadd.f32 %v2840_v52, %v3374_v54  ;;  %v571_v55 = vpop.f32.mrb[19].mxu0  ;;  %2874 = vmatmul.mubr.msk.bf16.gmra.mrb[12].mxu1 %vm718_vm1, %v670_v36  ;;  %v649_v57 = vmax.f32 %v577_v47, 0.0 }
 0x10c   : > { %v572_v56 = vadd.f32 %v3374_v54, %v571_v55  ;;  %v647_v59 = vmax.f32 %v569_v51, 0.0 }
 0x10d   : > { %v650_v58 = vmax.f32 %v580_v53, 0.0 }
 0x10e   : > { %v648_v60 = vmax.f32 %v572_v56, 0.0 }
 0x10f   : > { %v672_v61 = vpack.c.bf16 %v650_v58, %v649_v57 }
 0x110   : > { %v671_v62 = vpack.c.bf16 %v648_v60, %v647_v59  ;;  %v2843_v63 = vpop.f32.mrb[20].mxu0 }
 0x111   : > { %v593_v0 = vadd.f32 %v2843_v63, %v3374_v54  ;;  %v584_v1 = vpop.f32.mrb[21].mxu0 }
 0x112   : > { %v585_v2 = vadd.f32 %v3374_v54, %v584_v1  ;;  %v2844_v3 = vpop.f32.mrb[22].mxu0  ;;  %2877 = vmatprep.mubr.msk.bf16.mxu1 %vm718_vm1, %v671_v62 }
 0x113   : > { %v596_v7 = vadd.f32 %v2844_v3, %v3374_v54  ;;  %v587_v11 = vpop.f32.mrb[23].mxu0  ;;  %2878 = vmatmul.mubr.msk.bf16.gmra.mrb[16].mxu1 %vm718_vm1, %v672_v61  ;;  %v653_v17 = vmax.f32 %v593_v0, 0.0 }
 0x114   : > { %v588_v12 = vadd.f32 %v3374_v54, %v587_v11  ;;  %v651_v23 = vmax.f32 %v585_v2, 0.0 }
 0x115   : > { %v654_v18 = vmax.f32 %v596_v7, 0.0 }
 0x116   : > { %v652_v24 = vmax.f32 %v588_v12, 0.0 }
 0x117   : > { %v674_v29 = vpack.c.bf16 %v654_v18, %v653_v17 }
 0x118   : > { %v673_v30 = vpack.c.bf16 %v652_v24, %v651_v23  ;;  %v2847_v35 = vpop.f32.mrb[24].mxu0  ;;  %v3427_v24 = vld [vmem:[%s4230_s5] ss:$0 sm:$0xff] }
 0x119   : > { %v609_v36 = vadd.f32 %v2847_v35, %v3374_v54  ;;  %v600_v41 = vpop.f32.mrb[25].mxu0 }
 0x11a   : > { %v601_v42 = vadd.f32 %v3374_v54, %v600_v41  ;;  %v2848_v47 = vpop.f32.mrb[26].mxu0  ;;  %2881 = vmatprep.mubr.msk.bf16.mxu1 %vm718_vm1, %v673_v30 }
 0x11b   : > { %v612_v48 = vadd.f32 %v2848_v47, %v3374_v54  ;;  %v603_v51 = vpop.f32.mrb[27].mxu0  ;;  %2882 = vmatmul.mubr.msk.bf16.gmra.mrb[20].mxu1 %vm718_vm1, %v674_v29  ;;  %v657_v53 = vmax.f32 %v609_v36, 0.0 }
 0x11c   : > { %v604_v52 = vadd.f32 %v3374_v54, %v603_v51  ;;  %v655_v56 = vmax.f32 %v601_v42, 0.0 }
 0x11d   : > { %v658_v55 = vmax.f32 %v612_v48, 0.0 }
 0x11e   : > { %v656_v57 = vmax.f32 %v604_v52, 0.0 }
 0x11f   : > { %v676_v58 = vpack.c.bf16 %v658_v55, %v657_v53 }
 0x120   : > { %v675_v59 = vpack.c.bf16 %v656_v57, %v655_v56  ;;  %v2851_v60 = vpop.f32.mrb[28].mxu0 }
 0x121   : > { %v625_v61 = vadd.f32 %v2851_v60, %v3374_v54  ;;  %v616_v62 = vpop.f32.mrb[29].mxu0 }
 0x122   : > { %v617_v63 = vadd.f32 %v3374_v54, %v616_v62  ;;  %v2852_v0 = vpop.f32.mrb[30].mxu0  ;;  %2885 = vmatprep.mubr.msk.bf16.mxu1 %vm718_vm1, %v675_v59 }
 0x123   : > { %v628_v1 = vadd.f32 %v2852_v0, %v3374_v54  ;;  %v619_v2 = vpop.f32.mrb[31].mxu0  ;;  %2886 = vmatmul.mubr.msk.bf16.gmra.mrb[24].mxu1 %vm718_vm1, %v676_v58  ;;  %v661_v7 = vmax.f32 %v625_v61, 0.0 }
 0x124   : > { %v620_v3 = vadd.f32 %v3374_v54, %v619_v2  ;;  %v659_v12 = vmax.f32 %v617_v63, 0.0 }
 0x125   : > { %v662_v11 = vmax.f32 %v628_v1, 0.0 }
 0x126   : > { %v660_v17 = vmax.f32 %v620_v3, 0.0 }
 0x127   : > { %v678_v18 = vpack.c.bf16 %v662_v11, %v661_v7 }
 0x128   : > { %v677_v23 = vpack.c.bf16 %v660_v17, %v659_v12 }
 0x12a   : > { %2889 = vmatprep.mubr.msk.bf16.mxu1 %vm718_vm1, %v677_v23 }
 0x12b   : > { %2890 = vmatmul.mubr.msk.bf16.gmra.mrb[28].mxu1 %vm718_vm1, %v678_v18 }
 0x1c6   : > { %v2863_v29 = vpop.f32.mrb[0].mxu1 }
 0x1c7   : > { %v810_v30 = vadd.f32 %v2863_v29, %v3427_v24  ;;  %v801_v35 = vpop.f32.mrb[1].mxu1 }
 0x1c8   : > { %v802_v54 = vadd.f32 %v3427_v24, %v801_v35  ;;  %v2864_v36 = vpop.f32.mrb[2].mxu1 }
 0x1c9   : > { %v813_v41 = vadd.f32 %v2864_v36, %v3427_v24  ;;  %v804_v42 = vpop.f32.mrb[3].mxu1  ;;  %v930_v48 = vmax.f32 %v810_v30, 0.0 }
 0x1ca   : > { %v805_v47 = vadd.f32 %v3427_v24, %v804_v42  ;;  %v928_v52 = vmax.f32 %v802_v54, 0.0 }
 0x1cb   : > { %v931_v51 = vmax.f32 %v813_v41, 0.0 }
 0x1cc   : > { %v929_v53 = vmax.f32 %v805_v47, 0.0 }
 0x1cd   : > { %v3433_v55 = vpack.c.bf16 %v931_v51, %v930_v48 }
 0x1ce   : > { %v3435_v56 = vpack.c.bf16 %v929_v53, %v928_v52  ;;  %v2867_v57 = vpop.f32.mrb[4].mxu1 }
 0x1cf   : > { %v826_v58 = vadd.f32 %v2867_v57, %v3427_v24  ;;  %v817_v59 = vpop.f32.mrb[5].mxu1 }
 0x1d0   : > { %v818_v60 = vadd.f32 %v3427_v24, %v817_v59  ;;  %v2868_v61 = vpop.f32.mrb[6].mxu1  ;;  %2901 = vmatprep.mubr.msk.bf16.mxu0 (!%p2567_p4), %vm718_vm1, %v3435_v56 }
 0x1d1   : > { %v829_v62 = vadd.f32 %v2868_v61, %v3427_v24  ;;  %v820_v63 = vpop.f32.mrb[7].mxu1  ;;  %v934_v1 = vmax.f32 %v826_v58, 0.0 }
 0x1d2   : > { %v821_v0 = vadd.f32 %v3427_v24, %v820_v63  ;;  %v932_v3 = vmax.f32 %v818_v60, 0.0 }
 0x1d3   : > { %v935_v2 = vmax.f32 %v829_v62, 0.0 }
 0x1d4   : > { %v933_v7 = vmax.f32 %v821_v0, 0.0 }
 0x1d5   : > { %v3441_v11 = vpack.c.bf16 %v935_v2, %v934_v1 }
 0x1d6   : > { %v3443_v12 = vpack.c.bf16 %v933_v7, %v932_v3  ;;  %v2871_v17 = vpop.f32.mrb[8].mxu1 }
 0x1d7   : > { %v842_v18 = vadd.f32 %v2871_v17, %v3427_v24  ;;  %v833_v23 = vpop.f32.mrb[9].mxu1 }
 0x1d8   : > { %v834_v29 = vadd.f32 %v3427_v24, %v833_v23  ;;  %v2872_v30 = vpop.f32.mrb[10].mxu1 }
 0x1d9   : > { %v845_v35 = vadd.f32 %v2872_v30, %v3427_v24  ;;  %v836_v54 = vpop.f32.mrb[11].mxu1  ;;  %v938_v41 = vmax.f32 %v842_v18, 0.0 }
 0x1da   : > { %v837_v36 = vadd.f32 %v3427_v24, %v836_v54  ;;  %v936_v47 = vmax.f32 %v834_v29, 0.0 }
 0x1db   : > { %v939_v42 = vmax.f32 %v845_v35, 0.0 }
 0x1dc   : > { %v937_v48 = vmax.f32 %v837_v36, 0.0 }
 0x1dd   : > { %v3449_v51 = vpack.c.bf16 %v939_v42, %v938_v41 }
 0x1de   : > { %v3451_v52 = vpack.c.bf16 %v937_v48, %v936_v47  ;;  %v2875_v53 = vpop.f32.mrb[12].mxu1 }
 0x1df   : > { %v858_v57 = vadd.f32 %v2875_v53, %v3427_v24  ;;  %v849_v58 = vpop.f32.mrb[13].mxu1 }
 0x1e0   : > { %v850_v59 = vadd.f32 %v3427_v24, %v849_v58  ;;  %v2876_v60 = vpop.f32.mrb[14].mxu1 }
 0x1e1   : > { %v861_v61 = vadd.f32 %v2876_v60, %v3427_v24  ;;  %v852_v62 = vpop.f32.mrb[15].mxu1  ;;  %v942_v0 = vmax.f32 %v858_v57, 0.0 }
 0x1e2   : > { %v853_v63 = vadd.f32 %v3427_v24, %v852_v62  ;;  %v940_v2 = vmax.f32 %v850_v59, 0.0 }
 0x1e3   : > { %v943_v1 = vmax.f32 %v861_v61, 0.0 }
 0x1e4   : > { %v941_v3 = vmax.f32 %v853_v63, 0.0 }
 0x1e5   : > { %v3457_v7 = vpack.c.bf16 %v943_v1, %v942_v0 }
 0x1e6   : > { %v3459_v17 = vpack.c.bf16 %v941_v3, %v940_v2  ;;  %v2879_v18 = vpop.f32.mrb[16].mxu1 }
 0x1e7   : > { %v874_v23 = vadd.f32 %v2879_v18, %v3427_v24  ;;  %v865_v29 = vpop.f32.mrb[17].mxu1 }
 0x1e8   : > { %v866_v30 = vadd.f32 %v3427_v24, %v865_v29  ;;  %v2880_v35 = vpop.f32.mrb[18].mxu1 }
 0x1e9   : > { %v877_v54 = vadd.f32 %v2880_v35, %v3427_v24  ;;  %v868_v36 = vpop.f32.mrb[19].mxu1  ;;  %v946_v42 = vmax.f32 %v874_v23, 0.0 }
 0x1ea   : > { %v869_v41 = vadd.f32 %v3427_v24, %v868_v36  ;;  %v944_v48 = vmax.f32 %v866_v30, 0.0 }
 0x1eb   : > { %v947_v47 = vmax.f32 %v877_v54, 0.0 }
 0x1ec   : > { %v945_v53 = vmax.f32 %v869_v41, 0.0 }
 0x1ed   : > { %v3465_v57 = vpack.c.bf16 %v947_v47, %v946_v42 }
 0x1ee   : > { %v3467_v58 = vpack.c.bf16 %v945_v53, %v944_v48  ;;  %v2883_v59 = vpop.f32.mrb[20].mxu1 }
 0x1ef   : > { %v890_v60 = vadd.f32 %v2883_v59, %v3427_v24  ;;  %v881_v61 = vpop.f32.mrb[21].mxu1 }
 0x1f0   : > { %v882_v62 = vadd.f32 %v3427_v24, %v881_v61  ;;  %v2884_v63 = vpop.f32.mrb[22].mxu1  ;;  %2917 = vmatprep.mubr.msk.bf16.mxu1 (!%p2567_p4), %vm718_vm1, %v3467_v58 }
 0x1f1   : > { %v893_v0 = vadd.f32 %v2884_v63, %v3427_v24  ;;  %v884_v1 = vpop.f32.mrb[23].mxu1  ;;  %v950_v3 = vmax.f32 %v890_v60, 0.0 }
 0x1f2   : > { %v885_v2 = vadd.f32 %v3427_v24, %v884_v1  ;;  %v948_v23 = vmax.f32 %v882_v62, 0.0 }
 0x1f3   : > { %v951_v18 = vmax.f32 %v893_v0, 0.0 }
 0x1f4   : > { %v949_v29 = vmax.f32 %v885_v2, 0.0 }
 0x1f5   : > { %v3473_v30 = vpack.c.bf16 %v951_v18, %v950_v3 }
 0x1f6   : > { %v3475_v35 = vpack.c.bf16 %v949_v29, %v948_v23  ;;  %v2887_v54 = vpop.f32.mrb[24].mxu1 }
 0x1f7   : > { %v906_v36 = vadd.f32 %v2887_v54, %v3427_v24  ;;  %v897_v41 = vpop.f32.mrb[25].mxu1 }
 0x1f8   : > { %v898_v42 = vadd.f32 %v3427_v24, %v897_v41  ;;  %v2888_v47 = vpop.f32.mrb[26].mxu1 }
 0x1f9   : > { %v909_v48 = vadd.f32 %v2888_v47, %v3427_v24  ;;  %v900_v53 = vpop.f32.mrb[27].mxu1  ;;  %v954_v60 = vmax.f32 %v906_v36, 0.0 }
 0x1fa   : > { %v901_v59 = vadd.f32 %v3427_v24, %v900_v53  ;;  %v952_v62 = vmax.f32 %v898_v42, 0.0 }
 0x1fb   : > { %v955_v61 = vmax.f32 %v909_v48, 0.0 }
 0x1fc   : > { %v953_v63 = vmax.f32 %v901_v59, 0.0 }
 0x1fd   : > { %v3481_v0 = vpack.c.bf16 %v955_v61, %v954_v60  ;;  %v3119_v61 = vld [vmem:[%s4231_s6] sm:$0xff] (!%p2567_p4)  }
 0x1fe   : > { %v3483_v1 = vpack.c.bf16 %v953_v63, %v952_v62  ;;  %v2891_v2 = vpop.f32.mrb[28].mxu1  ;;  %2893 = vmatprep.subr.bf16.mxu0 (!%p2567_p4), %v3119_v61  ;;  %3081 = vmatprep.subr.bf16.mxu1 (!%p2567_p4), %v3119_v61  ;;  %v3121_v62 = vld [vmem:[%s4231_s6 + $0x10] sm:$0xff] (!%p2567_p4)   ;;  %v3122_v63 = vld [vmem:[%s4231_s6 + $0x18] sm:$0xff] (!%p2567_p4)  }
 0x1ff   : > { %v922_v3 = vadd.f32 %v2891_v2, %v3427_v24  ;;  %v913_v18 = vpop.f32.mrb[29].mxu1  ;;  %2894 = vmatpush3.bf16.msra.mxu0 (!%p2567_p4), %v3119_v61  ;;  %3085 = vmatpush3.bf16.msra.mxu1 (!%p2567_p4), %v3119_v61  ;;  %v3541_v2 = vld [vmem:[%s4232_s7] ss:$0 sm:$0xff] (!%p2567_p4) }
 0x200   : > { %v914_v23 = vadd.f32 %v3427_v24, %v913_v18  ;;  %v2892_v29 = vpop.f32.mrb[30].mxu1  ;;  %979 = sbr.rel (%p2567_p4) target bundleno = 769 (0x301), region = 52 }
 0x201   : > { %v925_v54 = vadd.f32 %v2892_v29, %v3427_v24  ;;  %v916_v41 = vpop.f32.mrb[31].mxu1  ;;  %v958_v36 = vmax.f32 %v922_v3, 0.0 }
 0x202   : > { %v917_v47 = vadd.f32 %v3427_v24, %v916_v41  ;;  %v956_v42 = vmax.f32 %v914_v23, 0.0  ;;  %v3120_v24 = vld [vmem:[%s4231_s6 + $0x8] sm:$0xff] (!%p2567_p4)  }
 0x203   : > { %v959_v48 = vmax.f32 %v925_v54, 0.0  ;;  %2895 = vmatprep.subr.bf16.mxu0 (!%p2567_p4), %v3120_v24  ;;  %3082 = vmatprep.subr.bf16.mxu1 (!%p2567_p4), %v3120_v24 }
 0x204   : > { %v957_v53 = vmax.f32 %v917_v47, 0.0  ;;  %2896 = vmatpush3.bf16.msra.mxu0 (!%p2567_p4), %v3120_v24  ;;  %3086 = vmatpush3.bf16.msra.mxu1 (!%p2567_p4), %v3120_v24 }
 0x205   : > { %v3489_v59 = vpack.c.bf16 %v959_v48, %v958_v36  ;;  %2897 = vmatprep.subr.bf16.mxu0 (!%p2567_p4), %v3121_v62  ;;  %3083 = vmatprep.subr.bf16.mxu1 (!%p2567_p4), %v3121_v62 }
 0x206   : > { %v3491_v60 = vpack.c.bf16 %v957_v53, %v956_v42 }
 0x208   : > { %2898 = vmatpush3.bf16.msra.mxu0 %v3121_v62  ;;  %3087 = vmatpush3.bf16.msra.mxu1 %v3121_v62 }
 0x209   : > { %2899 = vmatprep.subr.bf16.mxu0 %v3122_v63  ;;  %3084 = vmatprep.subr.bf16.mxu1 %v3122_v63 }
 0x20c   : > { %2900 = vmatpush3.bf16.msra.mxu0 %v3122_v63  ;;  %3088 = vmatpush3.bf16.msra.mxu1 %v3122_v63 }
 0x20f   : > { %2902 = vmatmul.mubr.msk.bf16.vlgmr.msra.gmra.mrb[0].mxu0 %vm718_vm1, %v3433_v55  ;;  %2918 = vmatmul.mubr.msk.bf16.vlgmr.msra.gmra.mrb[0].mxu1 %vm718_vm1, %v3465_v57 }
 0x210   : > { %2905 = vmatprep.mubr.msk.bf16.mxu0 %vm718_vm1, %v3443_v12  ;;  %2921 = vmatprep.mubr.msk.bf16.mxu1 %vm718_vm1, %v3475_v35 }
 0x217   : > { %2906 = vmatmul.mubr.msk.bf16.gmra.mrb[4].mxu0 %vm718_vm1, %v3441_v11  ;;  %2922 = vmatmul.mubr.msk.bf16.gmra.mrb[4].mxu1 %vm718_vm1, %v3473_v30 }
 0x218   : > { %2909 = vmatprep.mubr.msk.bf16.mxu0 %vm718_vm1, %v3451_v52  ;;  %2925 = vmatprep.mubr.msk.bf16.mxu1 %vm718_vm1, %v3483_v1 }
 0x21f   : > { %2910 = vmatmul.mubr.msk.bf16.gmra.mrb[8].mxu0 %vm718_vm1, %v3449_v51  ;;  %2926 = vmatmul.mubr.msk.bf16.gmra.mrb[8].mxu1 %vm718_vm1, %v3481_v0 }
 0x220   : > { %2913 = vmatprep.mubr.msk.bf16.mxu0 %vm718_vm1, %v3459_v17  ;;  %2929 = vmatprep.mubr.msk.bf16.mxu1 %vm718_vm1, %v3491_v60 }
 0x227   : > { %2914 = vmatmul.mubr.msk.bf16.gmra.mrb[12].mxu0 %vm718_vm1, %v3457_v7  ;;  %2930 = vmatmul.mubr.msk.bf16.gmra.mrb[12].mxu1 %vm718_vm1, %v3489_v59 }
 0x2e2   : > { %v2903_v3 = vpop.f32.mrb[0].mxu0  ;;  %v2919_v18 = vpop.f32.mrb[0].mxu1 }
 0x2e3   : > { %v1110_v23 = vadd.f32 %v2903_v3, %v3541_v2  ;;  %v1174_v29 = vadd.f32 %v2919_v18, %v3541_v2  ;;  %v1101_v54 = vpop.f32.mrb[1].mxu0  ;;  %v1165_v41 = vpop.f32.mrb[1].mxu1 }
 0x2e4   : > { %v1102_v47 = vadd.f32 %v3541_v2, %v1101_v54  ;;  %v1166_v36 = vadd.f32 %v3541_v2, %v1165_v41  ;;  %v2904_v48 = vpop.f32.mrb[2].mxu0  ;;  %v2920_v42 = vpop.f32.mrb[2].mxu1 }
 0x2e5   : > { %1230 = vst.msk [vmem:[%s3219_s25 + $0x10] sm:$0xff] %vm421_vm0, %v1110_v23  ;;  %1246 = vst.msk [vmem:[%s3219_s25 + $0x90] sm:$0xff] %vm421_vm0, %v1174_v29  ;;  %v1113_v53 = vadd.f32 %v2904_v48, %v3541_v2  ;;  %v1177_v61 = vadd.f32 %v2920_v42, %v3541_v2  ;;  %v1104_v24 = vpop.f32.mrb[3].mxu0  ;;  %v1168_v62 = vpop.f32.mrb[3].mxu1 }
 0x2e6   : > { %1228 = vst.msk [vmem:[%s3219_s25] sm:$0xff] %vm421_vm0, %v1102_v47  ;;  %1244 = vst.msk [vmem:[%s3219_s25 + $0x80] sm:$0xff] %vm421_vm0, %v1166_v36  ;;  %v1105_v63 = vadd.f32 %v3541_v2, %v1104_v24  ;;  %v1169_v3 = vadd.f32 %v3541_v2, %v1168_v62 }
 0x2e7   : > { %1231 = vst.msk [vmem:[%s3219_s25 + $0x18] sm:$0xff] %vm421_vm0, %v1113_v53  ;;  %1247 = vst.msk [vmem:[%s3219_s25 + $0x98] sm:$0xff] %vm421_vm0, %v1177_v61 }
 0x2e8   : > { %1229 = vst.msk [vmem:[%s3219_s25 + $0x8] sm:$0xff] %vm421_vm0, %v1105_v63  ;;  %1245 = vst.msk [vmem:[%s3219_s25 + $0x88] sm:$0xff] %vm421_vm0, %v1169_v3 }
 0x2ea   : > { %v2907_v18 = vpop.f32.mrb[4].mxu0  ;;  %v2923_v23 = vpop.f32.mrb[4].mxu1 }
 0x2eb   : > { %v1126_v29 = vadd.f32 %v2907_v18, %v3541_v2  ;;  %v1190_v54 = vadd.f32 %v2923_v23, %v3541_v2  ;;  %v1117_v41 = vpop.f32.mrb[5].mxu0  ;;  %v1181_v47 = vpop.f32.mrb[5].mxu1 }
 0x2ec   : > { %v1118_v36 = vadd.f32 %v3541_v2, %v1117_v41  ;;  %v1182_v48 = vadd.f32 %v3541_v2, %v1181_v47  ;;  %v2908_v42 = vpop.f32.mrb[6].mxu0  ;;  %v2924_v53 = vpop.f32.mrb[6].mxu1 }
 0x2ed   : > { %1234 = vst.msk [vmem:[%s3219_s25 + $0x30] sm:$0xff] %vm421_vm0, %v1126_v29  ;;  %1250 = vst.msk [vmem:[%s3219_s25 + $0xb0] sm:$0xff] %vm421_vm0, %v1190_v54  ;;  %v1129_v61 = vadd.f32 %v2908_v42, %v3541_v2  ;;  %v1193_v24 = vadd.f32 %v2924_v53, %v3541_v2  ;;  %v1120_v62 = vpop.f32.mrb[7].mxu0  ;;  %v1184_v63 = vpop.f32.mrb[7].mxu1 }
 0x2ee   : > { %1232 = vst.msk [vmem:[%s3219_s25 + $0x20] sm:$0xff] %vm421_vm0, %v1118_v36  ;;  %1248 = vst.msk [vmem:[%s3219_s25 + $0xa0] sm:$0xff] %vm421_vm0, %v1182_v48  ;;  %v1121_v3 = vadd.f32 %v3541_v2, %v1120_v62  ;;  %v1185_v18 = vadd.f32 %v3541_v2, %v1184_v63 }
 0x2ef   : > { %1235 = vst.msk [vmem:[%s3219_s25 + $0x38] sm:$0xff] %vm421_vm0, %v1129_v61  ;;  %1251 = vst.msk [vmem:[%s3219_s25 + $0xb8] sm:$0xff] %vm421_vm0, %v1193_v24 }
 0x2f0   : > { %1233 = vst.msk [vmem:[%s3219_s25 + $0x28] sm:$0xff] %vm421_vm0, %v1121_v3  ;;  %1249 = vst.msk [vmem:[%s3219_s25 + $0xa8] sm:$0xff] %vm421_vm0, %v1185_v18 }
 0x2f2   : > { %v2911_v23 = vpop.f32.mrb[8].mxu0  ;;  %v2927_v29 = vpop.f32.mrb[8].mxu1 }
 0x2f3   : > { %v1142_v54 = vadd.f32 %v2911_v23, %v3541_v2  ;;  %v1206_v41 = vadd.f32 %v2927_v29, %v3541_v2  ;;  %v1133_v47 = vpop.f32.mrb[9].mxu0  ;;  %v1197_v36 = vpop.f32.mrb[9].mxu1 }
 0x2f4   : > { %v1134_v48 = vadd.f32 %v3541_v2, %v1133_v47  ;;  %v1198_v42 = vadd.f32 %v3541_v2, %v1197_v36  ;;  %v2912_v53 = vpop.f32.mrb[10].mxu0  ;;  %v2928_v61 = vpop.f32.mrb[10].mxu1 }
 0x2f5   : > { %1238 = vst.msk [vmem:[%s3219_s25 + $0x50] sm:$0xff] %vm421_vm0, %v1142_v54  ;;  %1254 = vst.msk [vmem:[%s3219_s25 + $0xd0] sm:$0xff] %vm421_vm0, %v1206_v41  ;;  %v1145_v24 = vadd.f32 %v2912_v53, %v3541_v2  ;;  %v1209_v62 = vadd.f32 %v2928_v61, %v3541_v2  ;;  %v1136_v63 = vpop.f32.mrb[11].mxu0  ;;  %v1200_v3 = vpop.f32.mrb[11].mxu1 }
 0x2f6   : > { %1236 = vst.msk [vmem:[%s3219_s25 + $0x40] sm:$0xff] %vm421_vm0, %v1134_v48  ;;  %1252 = vst.msk [vmem:[%s3219_s25 + $0xc0] sm:$0xff] %vm421_vm0, %v1198_v42  ;;  %v1137_v18 = vadd.f32 %v3541_v2, %v1136_v63  ;;  %v1201_v23 = vadd.f32 %v3541_v2, %v1200_v3 }
 0x2f7   : > { %1239 = vst.msk [vmem:[%s3219_s25 + $0x58] sm:$0xff] %vm421_vm0, %v1145_v24  ;;  %1255 = vst.msk [vmem:[%s3219_s25 + $0xd8] sm:$0xff] %vm421_vm0, %v1209_v62 }
 0x2f8   : > { %1237 = vst.msk [vmem:[%s3219_s25 + $0x48] sm:$0xff] %vm421_vm0, %v1137_v18  ;;  %1253 = vst.msk [vmem:[%s3219_s25 + $0xc8] sm:$0xff] %vm421_vm0, %v1201_v23 }
 0x2fa   : > { %v2915_v29 = vpop.f32.mrb[12].mxu0  ;;  %v2931_v54 = vpop.f32.mrb[12].mxu1 }
 0x2fb   : > { %v1158_v41 = vadd.f32 %v2915_v29, %v3541_v2  ;;  %v1222_v47 = vadd.f32 %v2931_v54, %v3541_v2  ;;  %v1149_v36 = vpop.f32.mrb[13].mxu0  ;;  %v1213_v48 = vpop.f32.mrb[13].mxu1 }
 0x2fc   : > { %v1150_v42 = vadd.f32 %v3541_v2, %v1149_v36  ;;  %v1214_v53 = vadd.f32 %v3541_v2, %v1213_v48  ;;  %v2916_v61 = vpop.f32.mrb[14].mxu0  ;;  %v2932_v24 = vpop.f32.mrb[14].mxu1 }
 0x2fd   : > { %1242 = vst.msk [vmem:[%s3219_s25 + $0x70] sm:$0xff] %vm421_vm0, %v1158_v41  ;;  %1258 = vst.msk [vmem:[%s3219_s25 + $0xf0] sm:$0xff] %vm421_vm0, %v1222_v47  ;;  %v1161_v62 = vadd.f32 %v2916_v61, %v3541_v2  ;;  %v1225_v63 = vadd.f32 %v2932_v24, %v3541_v2  ;;  %v1152_v3 = vpop.f32.mrb[15].mxu0  ;;  %v1216_v18 = vpop.f32.mrb[15].mxu1 }
 0x2fe   : > { %1240 = vst.msk [vmem:[%s3219_s25 + $0x60] sm:$0xff] %vm421_vm0, %v1150_v42  ;;  %1256 = vst.msk [vmem:[%s3219_s25 + $0xe0] sm:$0xff] %vm421_vm0, %v1214_v53  ;;  %v1153_v23 = vadd.f32 %v3541_v2, %v1152_v3  ;;  %v1217_v29 = vadd.f32 %v3541_v2, %v1216_v18 }
 0x2ff   : > { %1243 = vst.msk [vmem:[%s3219_s25 + $0x78] sm:$0xff] %vm421_vm0, %v1161_v62  ;;  %1259 = vst.msk [vmem:[%s3219_s25 + $0xf8] sm:$0xff] %vm421_vm0, %v1225_v63 }
 0x300   : > { %1241 = vst.msk [vmem:[%s3219_s25 + $0x68] sm:$0xff] %vm421_vm0, %v1153_v23  ;;  %1257 = vst.msk [vmem:[%s3219_s25 + $0xe8] sm:$0xff] %vm421_vm0, %v1217_v29 }
 0x301 PF: > { %p2589_p5 = scmp.lt.s32.totalorder %s3197_s9, 0 }
 0x302   : > { %v3123_v54 = vld [vmem:[%s4227_s2] sm:$0xff] (!%p2589_p5)   ;;  %v1264_v41 = vlaneseq (!%p2589_p5)  ;;  %3017 = vmatprep.mubr.msk.bf16.mxu0 (!%p2589_p5), %vm718_vm1, %v3435_v56  ;;  %v3124_v2 = vld [vmem:[%s4227_s2 + $0x8] sm:$0xff] (!%p2589_p5)   ;;  %v1266_v47 = vstv (!%p2589_p5), %s3197_s9  ;;  %v3127_v23 = vld [vmem:[%s4229_s4 + $0x10] sm:$0xff] (!%p2589_p5)  }
 0x303   : > { %1263 = sbr.rel (%p2589_p5) target bundleno = 1499 (0x5db), region = 56  ;;  %2933 = vmatprep.subr.bf16.mxu1 (!%p2589_p5), %v3123_v54  ;;  %v3125_v48 = vld [vmem:[%s4229_s4] sm:$0xff] (!%p2589_p5)  }
 0x304   : > { %v3649_v36 = vand.u32 (!%p2589_p5), 127, %v1264_v41  ;;  %2934 = vmatpush3.bf16.msra.mxu1 (!%p2589_p5), %v3123_v54 }
 0x305   : > { %2935 = vmatprep.subr.bf16.mxu1 (!%p2589_p5), %v3124_v2 }
 0x306   : > { %vm1267_vm2 = vcmp.eq.s32.totalorder (!%p2589_p5), %v3649_v36, %v1266_v47  ;;  %vm2381_vm4 = vcmp.lt.s32.totalorder (!%p2589_p5), %v3649_v36, 16 }
 0x307   : > { %vm3655_vm3 = vmpackc.low (!%p2589_p5), %vm1267_vm2, %vm1267_vm2 }
 0x308   : > { %v1269_v56 = vsel (!%p2589_p5), %vm3655_vm3, 0, %v3222_v4  ;;  %v1270_v53 = vsel (!%p2589_p5), %vm3655_vm3, 0, %v3225_v5  ;;  %v1271_v61 = vsel (!%p2589_p5), %vm3655_vm3, 0, %v3228_v6  ;;  %v1272_v24 = vsel (!%p2589_p5), %vm3655_vm3, 0, %v3233_v8  ;;  %2936 = vmatpush3.bf16.msra.mxu1 (!%p2589_p5), %v3124_v2  ;;  %v3126_v6 = vld [vmem:[%s4229_s4 + $0x8] sm:$0xff] (!%p2589_p5)  }
 0x309   : > { %v2591_v62 = vcombine.low (!%p2589_p5), %v1269_v56, %v1270_v53  ;;  %v2592_v63 = vcombine.low (!%p2589_p5), %v1271_v61, %v1272_v24  ;;  %v1273_v3 = vsel (!%p2589_p5), %vm3655_vm3, 0, %v3236_v9  ;;  %v1274_v4 = vsel (!%p2589_p5), %vm3655_vm3, 0, %v3239_v10  ;;  %2969 = vmatprep.subr.bf16.mxu1 (!%p2589_p5), %v3125_v48 }
 0x30a   : > { %v2593_v5 = vcombine.low %v1273_v3, %v1274_v4  ;;  %v1275_v8 = vsel %vm3655_vm3, 0, %v3249_v13  ;;  %v1276_v9 = vsel %vm3655_vm3, 0, %v3252_v14  ;;  %v1277_v10 = vsel %vm3655_vm3, 0, %v3255_v15  ;;  %v3128_v14 = vld [vmem:[%s4229_s4 + $0x18] sm:$0xff]  }
 0x30b   : > { %2937 = vmatprep.mubr.msk.bf16.mxu1 %vm421_vm0, %v2591_v62  ;;  %v1278_v18 = vsel %vm3655_vm3, 0, %v3258_v16  ;;  %v2594_v29 = vcombine.low %v1275_v8, %v1276_v9  ;;  %v1279_v15 = vsel %vm3655_vm3, 0, %v3267_v19  ;;  %v1280_v16 = vsel %vm3655_vm3, 0, %v3270_v20 }
 0x30c   : > { %2938 = vmatmul.mubr.msk.bf16.vlgmr.msra.gmra.mrb[0].mxu1 %vm421_vm0, %v2592_v63  ;;  %v2595_v13 = vcombine.low %v1277_v10, %v1278_v18  ;;  %v1281_v54 = vsel %vm3655_vm3, 0, %v3273_v21  ;;  %v1282_v41 = vsel %vm3655_vm3, 0, %v3276_v22  ;;  %v2596_v2 = vcombine.low %v1279_v15, %v1280_v16 }
 0x30d   : > { %2941 = vmatprep.mubr.msk.bf16.mxu1 %vm421_vm0, %v2593_v5  ;;  %2970 = vmatpush3.bf16.msra.mxu1 %v3125_v48  ;;  %v2597_v47 = vcombine.low %v1281_v54, %v1282_v41  ;;  %v1283_v19 = vsel %vm3655_vm3, 0, %v3285_v25  ;;  %v1284_v20 = vsel %vm3655_vm3, 0, %v3288_v26  ;;  %v1285_v21 = vsel %vm3655_vm3, 0, %v3291_v27 }
 0x30e   : > { %2971 = vmatprep.subr.bf16.mxu1 %v3126_v6  ;;  %v1286_v22 = vsel %vm3655_vm3, 0, %v3294_v28  ;;  %v2598_v48 = vcombine.low %v1283_v19, %v1284_v20  ;;  %v1287_v25 = vsel %vm3655_vm3, 0, %v3303_v31  ;;  %v1288_v26 = vsel %vm3655_vm3, 0, %v3306_v32 }
 0x30f   : > { %v2599_v56 = vcombine.low %v1285_v21, %v1286_v22  ;;  %v1289_v27 = vsel %vm3655_vm3, 0, %v3309_v33  ;;  %v1290_v28 = vsel %vm3655_vm3, 0, %v3312_v34  ;;  %v2600_v53 = vcombine.low %v1287_v25, %v1288_v26 }
 0x310   : > { %v2601_v61 = vcombine.low %v1289_v27, %v1290_v28  ;;  %v1291_v31 = vsel %vm3655_vm3, 0, %v3321_v37  ;;  %v1292_v32 = vsel %vm3655_vm3, 0, %v3324_v38  ;;  %v1293_v33 = vsel %vm3655_vm3, 0, %v3327_v39 }
 0x311   : > { %2972 = vmatpush3.bf16.msra.mxu1 %v3126_v6  ;;  %v1294_v34 = vsel %vm3655_vm3, 0, %v3330_v40  ;;  %v2602_v24 = vcombine.low %v1291_v31, %v1292_v32  ;;  %v1295_v37 = vsel %vm3655_vm3, 0, %v3339_v43  ;;  %v1296_v38 = vsel %vm3655_vm3, 0, %v3342_v44 }
 0x312   : > { %2973 = vmatprep.subr.bf16.mxu1 %v3127_v23  ;;  %v2603_v62 = vcombine.low %v1293_v33, %v1294_v34  ;;  %v1297_v39 = vsel %vm3655_vm3, 0, %v3345_v45  ;;  %v1298_v40 = vsel %vm3655_vm3, 0, %v3348_v46  ;;  %v2604_v63 = vcombine.low %v1295_v37, %v1296_v38  ;;  %v3129_v45 = vld [vmem:[%s4231_s6] sm:$0xff]   ;;  %v3130_v46 = vld [vmem:[%s4231_s6 + $0x8] sm:$0xff]  }
 0x313   : > { %v2605_v3 = vcombine.low %v1297_v39, %v1298_v40  ;;  %v1299_v43 = vsel %vm3655_vm3, 0, %v3357_v49  ;;  %v1300_v44 = vsel %vm3655_vm3, 0, %v3360_v50  ;;  %3009 = vmatprep.subr.bf16.mxu0 %v3129_v45  ;;  %v3131_v49 = vld [vmem:[%s4231_s6 + $0x10] sm:$0xff]   ;;  %v3132_v50 = vld [vmem:[%s4231_s6 + $0x18] sm:$0xff]  }
 0x314   : > { %2942 = vmatmul.mubr.msk.bf16.gmra.mrb[4].mxu1 %vm421_vm0, %v2594_v29  ;;  %v2606_v4 = vcombine.low %v1299_v43, %v1300_v44  ;;  %3010 = vmatpush3.bf16.msra.mxu0 %v3129_v45 }
 0x315   : > { %2945 = vmatprep.mubr.msk.bf16.mxu1 %vm421_vm0, %v2595_v13  ;;  %2974 = vmatpush3.bf16.msra.mxu1 %v3127_v23 }
 0x316   : > { %2975 = vmatprep.subr.bf16.mxu1 %v3128_v14  ;;  %3011 = vmatprep.subr.bf16.mxu0 %v3130_v46 }
 0x318   : > { %3012 = vmatpush3.bf16.msra.mxu0 %v3130_v46 }
 0x319   : > { %2976 = vmatpush3.bf16.msra.mxu1 %v3128_v14  ;;  %3013 = vmatprep.subr.bf16.mxu0 %v3131_v49 }
 0x31c   : > { %2946 = vmatmul.mubr.msk.bf16.gmra.mrb[8].mxu1 %vm421_vm0, %v2596_v2  ;;  %3014 = vmatpush3.bf16.msra.mxu0 %v3131_v49 }
 0x31d   : > { %2949 = vmatprep.mubr.msk.bf16.mxu1 %vm421_vm0, %v2597_v47  ;;  %3015 = vmatprep.subr.bf16.mxu0 %v3132_v50 }
 0x320   : > { %3016 = vmatpush3.bf16.msra.mxu0 %v3132_v50 }
 0x323   : > { %3018 = vmatmul.mubr.msk.bf16.vlgmr.msra.gmra.mrb[0].mxu0 %vm718_vm1, %v3433_v55  ;;  %v3817_v55 = vld [vmem:[%s4228_s3] ss:$0 sm:$0xff] }
 0x324   : > { %2950 = vmatmul.mubr.msk.bf16.gmra.mrb[12].mxu1 %vm421_vm0, %v2598_v48  ;;  %3021 = vmatprep.mubr.msk.bf16.mxu0 %vm718_vm1, %v3443_v12 }
 0x325   : > { %2953 = vmatprep.mubr.msk.bf16.mxu1 %vm421_vm0, %v2599_v56 }
 0x32b   : > { %3022 = vmatmul.mubr.msk.bf16.gmra.mrb[4].mxu0 %vm718_vm1, %v3441_v11 }
 0x32c   : > { %2954 = vmatmul.mubr.msk.bf16.gmra.mrb[16].mxu1 %vm421_vm0, %v2600_v53  ;;  %3025 = vmatprep.mubr.msk.bf16.mxu0 %vm718_vm1, %v3451_v52 }
 0x32d   : > { %2957 = vmatprep.mubr.msk.bf16.mxu1 %vm421_vm0, %v2601_v61 }
 0x333   : > { %3026 = vmatmul.mubr.msk.bf16.gmra.mrb[8].mxu0 %vm718_vm1, %v3449_v51 }
 0x334   : > { %2958 = vmatmul.mubr.msk.bf16.gmra.mrb[20].mxu1 %vm421_vm0, %v2602_v24  ;;  %3029 = vmatprep.mubr.msk.bf16.mxu0 %vm718_vm1, %v3459_v17 }
 0x335   : > { %2961 = vmatprep.mubr.msk.bf16.mxu1 %vm421_vm0, %v2603_v62 }
 0x33b   : > { %3030 = vmatmul.mubr.msk.bf16.gmra.mrb[12].mxu0 %vm718_vm1, %v3457_v7 }
 0x33c   : > { %2962 = vmatmul.mubr.msk.bf16.gmra.mrb[24].mxu1 %vm421_vm0, %v2604_v63  ;;  %3033 = vmatprep.mubr.msk.bf16.mxu0 %vm718_vm1, %v3467_v58 }
 0x33d   : > { %2965 = vmatprep.mubr.msk.bf16.mxu1 %vm421_vm0, %v2605_v3 }
 0x343   : > { %3034 = vmatmul.mubr.msk.bf16.gmra.mrb[16].mxu0 %vm718_vm1, %v3465_v57 }
 0x344   : > { %2966 = vmatmul.mubr.msk.bf16.gmra.mrb[28].mxu1 %vm421_vm0, %v2606_v4  ;;  %3037 = vmatprep.mubr.msk.bf16.mxu0 %vm718_vm1, %v3475_v35 }
 0x34b   : > { %3038 = vmatmul.mubr.msk.bf16.gmra.mrb[20].mxu0 %vm718_vm1, %v3473_v30 }
 0x34c   : > { %3041 = vmatprep.mubr.msk.bf16.mxu0 %vm718_vm1, %v3483_v1 }
 0x353   : > { %3042 = vmatmul.mubr.msk.bf16.gmra.mrb[24].mxu0 %vm718_vm1, %v3481_v0 }
 0x354   : > { %3045 = vmatprep.mubr.msk.bf16.mxu0 %vm718_vm1, %v3491_v60 }
 0x35b   : > { %3046 = vmatmul.mubr.msk.bf16.gmra.mrb[28].mxu0 %vm718_vm1, %v3489_v59 }
 0x3df   : > { %v2939_v11 = vpop.f32.mrb[0].mxu1 }
 0x3e0   : > { %v1495_v12 = vadd.f32 %v2939_v11, %v3817_v55  ;;  %v1486_v51 = vpop.f32.mrb[1].mxu1 }
 0x3e1   : > { %v1487_v52 = vadd.f32 %v3817_v55, %v1486_v51  ;;  %v2940_v7 = vpop.f32.mrb[2].mxu1 }
 0x3e2   : > { %v1498_v17 = vadd.f32 %v2940_v7, %v3817_v55  ;;  %v1489_v57 = vpop.f32.mrb[3].mxu1  ;;  %v1615_v30 = vmax.f32 %v1495_v12, 0.0 }
 0x3e3   : > { %v1490_v58 = vadd.f32 %v3817_v55, %v1489_v57  ;;  %v1613_v42 = vmax.f32 %v1487_v52, 0.0 }
 0x3e4   : > { %v1616_v35 = vmax.f32 %v1498_v17, 0.0 }
 0x3e5   : > { %v1614_v5 = vmax.f32 %v1490_v58, 0.0 }
 0x3e6   : > { %v1646_v1 = vpack.c.bf16 %v1616_v35, %v1615_v30 }
 0x3e7   : > { %v1645_v6 = vpack.c.bf16 %v1614_v5, %v1613_v42  ;;  %v2943_v8 = vpop.f32.mrb[4].mxu1 }
 0x3e8   : > { %v1511_v9 = vadd.f32 %v2943_v8, %v3817_v55  ;;  %v1502_v10 = vpop.f32.mrb[5].mxu1 }
 0x3e9   : > { %v1503_v18 = vadd.f32 %v3817_v55, %v1502_v10  ;;  %v2944_v23 = vpop.f32.mrb[6].mxu1  ;;  %2977 = vmatprep.mubr.msk.bf16.mxu1 %vm718_vm1, %v1645_v6 }
 0x3ea   : > { %v1514_v29 = vadd.f32 %v2944_v23, %v3817_v55  ;;  %v1505_v13 = vpop.f32.mrb[7].mxu1  ;;  %2978 = vmatmul.mubr.msk.bf16.vlgmr.msra.gmra.mrb[32].mxu1 %vm718_vm1, %v1646_v1  ;;  %v1619_v14 = vmax.f32 %v1511_v9, 0.0 }
 0x3eb   : > { %v1506_v0 = vadd.f32 %v3817_v55, %v1505_v13  ;;  %v1617_v15 = vmax.f32 %v1503_v18, 0.0 }
 0x3ec   : > { %v1620_v60 = vmax.f32 %v1514_v29, 0.0 }
 0x3ed   : > { %v1618_v16 = vmax.f32 %v1506_v0, 0.0 }
 0x3ee   : > { %v1648_v54 = vpack.c.bf16 %v1620_v60, %v1619_v14 }
 0x3ef   : > { %v1647_v41 = vpack.c.bf16 %v1618_v16, %v1617_v15  ;;  %v2947_v2 = vpop.f32.mrb[8].mxu1 }
 0x3f0   : > { %v1527_v47 = vadd.f32 %v2947_v2, %v3817_v55  ;;  %v1518_v19 = vpop.f32.mrb[9].mxu1 }
 0x3f1   : > { %v1519_v20 = vadd.f32 %v3817_v55, %v1518_v19  ;;  %v2948_v21 = vpop.f32.mrb[10].mxu1  ;;  %2981 = vmatprep.mubr.msk.bf16.mxu1 %vm718_vm1, %v1647_v41 }
 0x3f2   : > { %v1530_v22 = vadd.f32 %v2948_v21, %v3817_v55  ;;  %v1521_v48 = vpop.f32.mrb[11].mxu1  ;;  %2982 = vmatmul.mubr.msk.bf16.gmra.mrb[36].mxu1 %vm718_vm1, %v1648_v54  ;;  %v1623_v56 = vmax.f32 %v1527_v47, 0.0 }
 0x3f3   : > { %v1522_v59 = vadd.f32 %v3817_v55, %v1521_v48  ;;  %v1621_v26 = vmax.f32 %v1519_v20, 0.0 }
 0x3f4   : > { %v1624_v25 = vmax.f32 %v1530_v22, 0.0 }
 0x3f5   : > { %v1622_v27 = vmax.f32 %v1522_v59, 0.0 }
 0x3f6   : > { %v1650_v28 = vpack.c.bf16 %v1624_v25, %v1623_v56 }
 0x3f7   : > { %v1649_v53 = vpack.c.bf16 %v1622_v27, %v1621_v26  ;;  %v2951_v61 = vpop.f32.mrb[12].mxu1 }
 0x3f8   : > { %v1543_v31 = vadd.f32 %v2951_v61, %v3817_v55  ;;  %v1534_v32 = vpop.f32.mrb[13].mxu1 }
 0x3f9   : > { %v1535_v33 = vadd.f32 %v3817_v55, %v1534_v32  ;;  %v2952_v34 = vpop.f32.mrb[14].mxu1  ;;  %2985 = vmatprep.mubr.msk.bf16.mxu1 %vm718_vm1, %v1649_v53 }
 0x3fa   : > { %v1546_v24 = vadd.f32 %v2952_v34, %v3817_v55  ;;  %v1537_v62 = vpop.f32.mrb[15].mxu1  ;;  %2986 = vmatmul.mubr.msk.bf16.gmra.mrb[40].mxu1 %vm718_vm1, %v1650_v28  ;;  %v1627_v38 = vmax.f32 %v1543_v31, 0.0 }
 0x3fb   : > { %v1538_v37 = vadd.f32 %v3817_v55, %v1537_v62  ;;  %v1625_v40 = vmax.f32 %v1535_v33, 0.0 }
 0x3fc   : > { %v1628_v39 = vmax.f32 %v1546_v24, 0.0 }
 0x3fd   : > { %v1626_v63 = vmax.f32 %v1538_v37, 0.0 }
 0x3fe   : > { %v1652_v3 = vpack.c.bf16 %v1628_v39, %v1627_v38  ;;  %v3875_v38 = vpop.f32.mrb[0].mxu0 }
 0x3ff   : > { %v1651_v43 = vpack.c.bf16 %v1626_v63, %v1625_v40  ;;  %v2955_v44 = vpop.f32.mrb[16].mxu1  ;;  %v3877_v39 = vpop.f32.mrb[1].mxu0 }
 0x400   : > { %v1559_v4 = vadd.f32 %v2955_v44, %v3817_v55  ;;  %v1550_v45 = vpop.f32.mrb[17].mxu1  ;;  %v3879_v40 = vpop.f32.mrb[2].mxu0 }
 0x401   : > { %v1551_v46 = vadd.f32 %v3817_v55, %v1550_v45  ;;  %v2956_v49 = vpop.f32.mrb[18].mxu1  ;;  %2989 = vmatprep.mubr.msk.bf16.mxu1 %vm718_vm1, %v1651_v43  ;;  %v3881_v63 = vpop.f32.mrb[3].mxu0 }
 0x402   : > { %v1562_v50 = vadd.f32 %v2956_v49, %v3817_v55  ;;  %v1553_v11 = vpop.f32.mrb[19].mxu1  ;;  %2990 = vmatmul.mubr.msk.bf16.gmra.mrb[44].mxu1 %vm718_vm1, %v1652_v3  ;;  %v1631_v51 = vmax.f32 %v1559_v4, 0.0  ;;  %v3883_v3 = vpop.f32.mrb[4].mxu0 }
 0x403   : > { %v1554_v12 = vadd.f32 %v3817_v55, %v1553_v11  ;;  %v1629_v7 = vmax.f32 %v1551_v46, 0.0 }
 0x404   : > { %v1632_v52 = vmax.f32 %v1562_v50, 0.0 }
 0x405   : > { %v1630_v17 = vmax.f32 %v1554_v12, 0.0 }
 0x406   : > { %v1654_v57 = vpack.c.bf16 %v1632_v52, %v1631_v51 }
 0x407   : > { %v1653_v58 = vpack.c.bf16 %v1630_v17, %v1629_v7  ;;  %v2959_v30 = vpop.f32.mrb[20].mxu1 }
 0x408   : > { %v1575_v35 = vadd.f32 %v2959_v30, %v3817_v55  ;;  %v1566_v42 = vpop.f32.mrb[21].mxu1 }
 0x409   : > { %v1567_v5 = vadd.f32 %v3817_v55, %v1566_v42  ;;  %v2960_v1 = vpop.f32.mrb[22].mxu1  ;;  %2993 = vmatprep.mubr.msk.bf16.mxu1 %vm718_vm1, %v1653_v58 }
 0x40a   : > { %v1578_v6 = vadd.f32 %v2960_v1, %v3817_v55  ;;  %v1569_v8 = vpop.f32.mrb[23].mxu1  ;;  %2994 = vmatmul.mubr.msk.bf16.gmra.mrb[48].mxu1 %vm718_vm1, %v1654_v57  ;;  %v1635_v10 = vmax.f32 %v1575_v35, 0.0 }
 0x40b   : > { %v1570_v9 = vadd.f32 %v3817_v55, %v1569_v8  ;;  %v1633_v23 = vmax.f32 %v1567_v5, 0.0 }
 0x40c   : > { %v1636_v18 = vmax.f32 %v1578_v6, 0.0 }
 0x40d   : > { %v1634_v29 = vmax.f32 %v1570_v9, 0.0  ;;  %v3934_v9 = vld [vmem:[%s4230_s5] ss:$0 sm:$0xff] }
 0x40e   : > { %v1656_v13 = vpack.c.bf16 %v1636_v18, %v1635_v10 }
 0x40f   : > { %v1655_v0 = vpack.c.bf16 %v1634_v29, %v1633_v23  ;;  %v2963_v14 = vpop.f32.mrb[24].mxu1 }
 0x410   : > { %v1591_v60 = vadd.f32 %v2963_v14, %v3817_v55  ;;  %v1582_v15 = vpop.f32.mrb[25].mxu1 }
 0x411   : > { %v1583_v16 = vadd.f32 %v3817_v55, %v1582_v15  ;;  %v2964_v54 = vpop.f32.mrb[26].mxu1  ;;  %2997 = vmatprep.mubr.msk.bf16.mxu1 %vm718_vm1, %v1655_v0 }
 0x412   : > { %v1594_v41 = vadd.f32 %v2964_v54, %v3817_v55  ;;  %v1585_v2 = vpop.f32.mrb[27].mxu1  ;;  %2998 = vmatmul.mubr.msk.bf16.gmra.mrb[52].mxu1 %vm718_vm1, %v1656_v13  ;;  %v1639_v19 = vmax.f32 %v1591_v60, 0.0 }
 0x413   : > { %v1586_v47 = vadd.f32 %v3817_v55, %v1585_v2  ;;  %v1637_v21 = vmax.f32 %v1583_v16, 0.0 }
 0x414   : > { %v1640_v20 = vmax.f32 %v1594_v41, 0.0 }
 0x415   : > { %v1638_v22 = vmax.f32 %v1586_v47, 0.0 }
 0x416   : > { %v1658_v48 = vpack.c.bf16 %v1640_v20, %v1639_v19 }
 0x417   : > { %v1657_v59 = vpack.c.bf16 %v1638_v22, %v1637_v21  ;;  %v2967_v56 = vpop.f32.mrb[28].mxu1 }
 0x418   : > { %v1607_v25 = vadd.f32 %v2967_v56, %v3817_v55  ;;  %v1598_v26 = vpop.f32.mrb[29].mxu1 }
 0x419   : > { %v1599_v27 = vadd.f32 %v3817_v55, %v1598_v26  ;;  %v2968_v28 = vpop.f32.mrb[30].mxu1  ;;  %3001 = vmatprep.mubr.msk.bf16.mxu1 %vm718_vm1, %v1657_v59 }
 0x41a   : > { %v1610_v53 = vadd.f32 %v2968_v28, %v3817_v55  ;;  %v1601_v61 = vpop.f32.mrb[31].mxu1  ;;  %3002 = vmatmul.mubr.msk.bf16.gmra.mrb[56].mxu1 %vm718_vm1, %v1658_v48  ;;  %v1643_v32 = vmax.f32 %v1607_v25, 0.0 }
 0x41b   : > { %v1602_v31 = vadd.f32 %v3817_v55, %v1601_v61  ;;  %v1641_v34 = vmax.f32 %v1599_v27, 0.0  ;;  %v3885_v55 = vpop.f32.mrb[5].mxu0 }
 0x41c   : > { %v1644_v33 = vmax.f32 %v1610_v53, 0.0  ;;  %v3887_v43 = vpop.f32.mrb[6].mxu0 }
 0x41d   : > { %v1642_v24 = vmax.f32 %v1602_v31, 0.0  ;;  %v3889_v44 = vpop.f32.mrb[7].mxu0 }
 0x41e   : > { %v1660_v62 = vpack.c.bf16 %v1644_v33, %v1643_v32  ;;  %v3891_v4 = vpop.f32.mrb[8].mxu0 }
 0x41f   : > { %v1659_v37 = vpack.c.bf16 %v1642_v24, %v1641_v34  ;;  %v3893_v45 = vpop.f32.mrb[9].mxu0 }
 0x420   : > { %v3895_v46 = vpop.f32.mrb[10].mxu0 }
 0x421   : > { %3005 = vmatprep.mubr.msk.bf16.mxu1 %vm718_vm1, %v1659_v37  ;;  %v3897_v49 = vpop.f32.mrb[11].mxu0 }
 0x422   : > { %3006 = vmatmul.mubr.msk.bf16.gmra.mrb[60].mxu1 %vm718_vm1, %v1660_v62  ;;  %v3899_v50 = vpop.f32.mrb[12].mxu0 }
 0x423   : > { %v3901_v11 = vpop.f32.mrb[13].mxu0 }
 0x424   : > { %v3903_v12 = vpop.f32.mrb[14].mxu0 }
 0x425   : > { %v3905_v51 = vpop.f32.mrb[15].mxu0 }
 0x426   : > { %v3907_v52 = vpop.f32.mrb[16].mxu0 }
 0x427   : > { %v3909_v7 = vpop.f32.mrb[17].mxu0 }
 0x428   : > { %v3911_v17 = vpop.f32.mrb[18].mxu0 }
 0x429   : > { %v3913_v57 = vpop.f32.mrb[19].mxu0 }
 0x42a   : > { %v3915_v58 = vpop.f32.mrb[20].mxu0 }
 0x42b   : > { %v3917_v30 = vpop.f32.mrb[21].mxu0 }
 0x42c   : > { %v3919_v35 = vpop.f32.mrb[22].mxu0 }
 0x42d   : > { %v3921_v42 = vpop.f32.mrb[23].mxu0 }
 0x42e   : > { %v3923_v5 = vpop.f32.mrb[24].mxu0 }
 0x42f   : > { %v3925_v1 = vpop.f32.mrb[25].mxu0 }
 0x430   : > { %v3927_v6 = vpop.f32.mrb[26].mxu0 }
 0x431   : > { %v3929_v8 = vpop.f32.mrb[27].mxu0 }
 0x432   : > { %v3938_v0 = vpop.f32.mrb[28].mxu0 }
 0x433   : > { %v3941_v15 = vpop.f32.mrb[29].mxu0 }
 0x434   : > { %v3944_v54 = vpop.f32.mrb[30].mxu0 }
 0x435   : > { %v3946_v47 = vpop.f32.mrb[31].mxu0 }
 0x4bd   : > { %v2979_v10 = vpop.f32.mrb[32].mxu1 }
 0x4be   : > { %v1791_v18 = vadd.f32 %v2979_v10, %v3934_v9  ;;  %v1782_v23 = vpop.f32.mrb[33].mxu1 }
 0x4bf   : > { %v1783_v29 = vadd.f32 %v3934_v9, %v1782_v23  ;;  %v2980_v13 = vpop.f32.mrb[34].mxu1 }
 0x4c0   : > { %v1794_v14 = vadd.f32 %v2980_v13, %v3934_v9  ;;  %v1785_v60 = vpop.f32.mrb[35].mxu1  ;;  %v1911_v41 = vmax.f32 %v1791_v18, 0.0 }
 0x4c1   : > { %v1786_v16 = vadd.f32 %v3934_v9, %v1785_v60  ;;  %v1909_v19 = vmax.f32 %v1783_v29, 0.0 }
 0x4c2   : > { %v1912_v2 = vmax.f32 %v1794_v14, 0.0 }
 0x4c3   : > { %v1910_v20 = vmax.f32 %v1786_v16, 0.0 }
 0x4c4   : > { %v1942_v21 = vpack.c.bf16 %v1912_v2, %v1911_v41 }
 0x4c5   : > { %v1941_v22 = vpack.c.bf16 %v1910_v20, %v1909_v19  ;;  %v2983_v48 = vpop.f32.mrb[36].mxu1 }
 0x4c6   : > { %v1807_v59 = vadd.f32 %v2983_v48, %v3934_v9  ;;  %v1798_v56 = vpop.f32.mrb[37].mxu1 }
 0x4c7   : > { %v1799_v25 = vadd.f32 %v3934_v9, %v1798_v56  ;;  %v2984_v26 = vpop.f32.mrb[38].mxu1  ;;  %3049 = vmatprep.mubr.msk.bf16.mxu0 %vm718_vm1, %v1941_v22 }
 0x4c8   : > { %v1810_v27 = vadd.f32 %v2984_v26, %v3934_v9  ;;  %v1801_v28 = vpop.f32.mrb[39].mxu1  ;;  %3050 = vmatmul.mubr.msk.bf16.gmra.mrb[32].mxu0 %vm718_vm1, %v1942_v21  ;;  %v1915_v61 = vmax.f32 %v1807_v59, 0.0 }
 0x4c9   : > { %v1802_v53 = vadd.f32 %v3934_v9, %v1801_v28  ;;  %v1913_v32 = vmax.f32 %v1799_v25, 0.0 }
 0x4ca   : > { %v1916_v31 = vmax.f32 %v1810_v27, 0.0 }
 0x4cb   : > { %v1914_v33 = vmax.f32 %v1802_v53, 0.0 }
 0x4cc   : > { %v1944_v34 = vpack.c.bf16 %v1916_v31, %v1915_v61 }
 0x4cd   : > { %v1943_v24 = vpack.c.bf16 %v1914_v33, %v1913_v32  ;;  %v2987_v62 = vpop.f32.mrb[40].mxu1 }
 0x4ce   : > { %v1823_v37 = vadd.f32 %v2987_v62, %v3934_v9  ;;  %v1814_v10 = vpop.f32.mrb[41].mxu1 }
 0x4cf   : > { %v1815_v18 = vadd.f32 %v3934_v9, %v1814_v10  ;;  %v2988_v23 = vpop.f32.mrb[42].mxu1  ;;  %3053 = vmatprep.mubr.msk.bf16.mxu0 %vm718_vm1, %v1943_v24 }
 0x4d0   : > { %v1826_v29 = vadd.f32 %v2988_v23, %v3934_v9  ;;  %v1817_v13 = vpop.f32.mrb[43].mxu1  ;;  %3054 = vmatmul.mubr.msk.bf16.gmra.mrb[36].mxu0 %vm718_vm1, %v1944_v34  ;;  %v1919_v60 = vmax.f32 %v1823_v37, 0.0 }
 0x4d1   : > { %v1818_v14 = vadd.f32 %v3934_v9, %v1817_v13  ;;  %v1917_v41 = vmax.f32 %v1815_v18, 0.0 }
 0x4d2   : > { %v1920_v16 = vmax.f32 %v1826_v29, 0.0 }
 0x4d3   : > { %v1918_v2 = vmax.f32 %v1818_v14, 0.0 }
 0x4d4   : > { %v1946_v19 = vpack.c.bf16 %v1920_v16, %v1919_v60 }
 0x4d5   : > { %v1945_v20 = vpack.c.bf16 %v1918_v2, %v1917_v41  ;;  %v2991_v21 = vpop.f32.mrb[44].mxu1 }
 0x4d6   : > { %v1839_v22 = vadd.f32 %v2991_v21, %v3934_v9  ;;  %v1830_v48 = vpop.f32.mrb[45].mxu1 }
 0x4d7   : > { %v1831_v59 = vadd.f32 %v3934_v9, %v1830_v48  ;;  %v2992_v56 = vpop.f32.mrb[46].mxu1  ;;  %3057 = vmatprep.mubr.msk.bf16.mxu0 %vm718_vm1, %v1945_v20 }
 0x4d8   : > { %v1842_v25 = vadd.f32 %v2992_v56, %v3934_v9  ;;  %v1833_v26 = vpop.f32.mrb[47].mxu1  ;;  %3058 = vmatmul.mubr.msk.bf16.gmra.mrb[40].mxu0 %vm718_vm1, %v1946_v19  ;;  %v1923_v28 = vmax.f32 %v1839_v22, 0.0 }
 0x4d9   : > { %v1834_v27 = vadd.f32 %v3934_v9, %v1833_v26  ;;  %v1921_v61 = vmax.f32 %v1831_v59, 0.0 }
 0x4da   : > { %v1924_v53 = vmax.f32 %v1842_v25, 0.0 }
 0x4db   : > { %v1922_v31 = vmax.f32 %v1834_v27, 0.0 }
 0x4dc   : > { %v1948_v32 = vpack.c.bf16 %v1924_v53, %v1923_v28 }
 0x4dd   : > { %v1947_v33 = vpack.c.bf16 %v1922_v31, %v1921_v61  ;;  %v2995_v34 = vpop.f32.mrb[48].mxu1 }
 0x4de   : > { %v1855_v24 = vadd.f32 %v2995_v34, %v3934_v9  ;;  %v1846_v62 = vpop.f32.mrb[49].mxu1 }
 0x4df   : > { %v1847_v37 = vadd.f32 %v3934_v9, %v1846_v62  ;;  %v2996_v10 = vpop.f32.mrb[50].mxu1  ;;  %3061 = vmatprep.mubr.msk.bf16.mxu0 %vm718_vm1, %v1947_v33 }
 0x4e0   : > { %v1858_v18 = vadd.f32 %v2996_v10, %v3934_v9  ;;  %v1849_v23 = vpop.f32.mrb[51].mxu1  ;;  %3062 = vmatmul.mubr.msk.bf16.gmra.mrb[44].mxu0 %vm718_vm1, %v1948_v32  ;;  %v1927_v13 = vmax.f32 %v1855_v24, 0.0 }
 0x4e1   : > { %v1850_v29 = vadd.f32 %v3934_v9, %v1849_v23  ;;  %v1925_v60 = vmax.f32 %v1847_v37, 0.0 }
 0x4e2   : > { %v1928_v14 = vmax.f32 %v1858_v18, 0.0 }
 0x4e3   : > { %v1926_v16 = vmax.f32 %v1850_v29, 0.0 }
 0x4e4   : > { %v1950_v41 = vpack.c.bf16 %v1928_v14, %v1927_v13 }
 0x4e5   : > { %v1949_v2 = vpack.c.bf16 %v1926_v16, %v1925_v60  ;;  %v2999_v19 = vpop.f32.mrb[52].mxu1 }
 0x4e6   : > { %v1871_v20 = vadd.f32 %v2999_v19, %v3934_v9  ;;  %v1862_v21 = vpop.f32.mrb[53].mxu1 }
 0x4e7   : > { %v1863_v22 = vadd.f32 %v3934_v9, %v1862_v21  ;;  %v3000_v48 = vpop.f32.mrb[54].mxu1  ;;  %3065 = vmatprep.mubr.msk.bf16.mxu0 %vm718_vm1, %v1949_v2 }
 0x4e8   : > { %v1874_v59 = vadd.f32 %v3000_v48, %v3934_v9  ;;  %v1865_v56 = vpop.f32.mrb[55].mxu1  ;;  %3066 = vmatmul.mubr.msk.bf16.gmra.mrb[48].mxu0 %vm718_vm1, %v1950_v41  ;;  %v1931_v26 = vmax.f32 %v1871_v20, 0.0 }
 0x4e9   : > { %v1866_v25 = vadd.f32 %v3934_v9, %v1865_v56  ;;  %v1929_v28 = vmax.f32 %v1863_v22, 0.0 }
 0x4ea   : > { %v1932_v27 = vmax.f32 %v1874_v59, 0.0 }
 0x4eb   : > { %v1930_v53 = vmax.f32 %v1866_v25, 0.0 }
 0x4ec   : > { %v1952_v61 = vpack.c.bf16 %v1932_v27, %v1931_v26 }
 0x4ed   : > { %v1951_v31 = vpack.c.bf16 %v1930_v53, %v1929_v28  ;;  %v3003_v32 = vpop.f32.mrb[56].mxu1 }
 0x4ee   : > { %v1887_v33 = vadd.f32 %v3003_v32, %v3934_v9  ;;  %v1878_v34 = vpop.f32.mrb[57].mxu1 }
 0x4ef   : > { %v1879_v24 = vadd.f32 %v3934_v9, %v1878_v34  ;;  %v3004_v62 = vpop.f32.mrb[58].mxu1  ;;  %3069 = vmatprep.mubr.msk.bf16.mxu0 %vm718_vm1, %v1951_v31 }
 0x4f0   : > { %v1890_v37 = vadd.f32 %v3004_v62, %v3934_v9  ;;  %v1881_v10 = vpop.f32.mrb[59].mxu1  ;;  %3070 = vmatmul.mubr.msk.bf16.gmra.mrb[52].mxu0 %vm718_vm1, %v1952_v61  ;;  %v1935_v23 = vmax.f32 %v1887_v33, 0.0  ;;  %v3995_v61 = vld [vmem:[%s4232_s7] ss:$0 sm:$0xff] }
 0x4f1   : > { %v1882_v18 = vadd.f32 %v3934_v9, %v1881_v10  ;;  %v1933_v13 = vmax.f32 %v1879_v24, 0.0  ;;  %v2127_v34 = vadd.f32 %v3995_v61, %v3877_v39 }
 0x4f2   : > { %v1936_v29 = vmax.f32 %v1890_v37, 0.0  ;;  %v2138_v37 = vadd.f32 %v3879_v40, %v3995_v61 }
 0x4f3   : > { %v1934_v14 = vmax.f32 %v1882_v18, 0.0 }
 0x4f4   : > { %v1954_v60 = vpack.c.bf16 %v1936_v29, %v1935_v23  ;;  %v2130_v23 = vadd.f32 %v3995_v61, %v3881_v63 }
 0x4f5   : > { %v1953_v16 = vpack.c.bf16 %v1934_v14, %v1933_v13  ;;  %v3007_v41 = vpop.f32.mrb[60].mxu1  ;;  %v2151_v14 = vadd.f32 %v3883_v3, %v3995_v61 }
 0x4f6   : > { %v1903_v2 = vadd.f32 %v3007_v41, %v3934_v9  ;;  %v1894_v19 = vpop.f32.mrb[61].mxu1  ;;  %v2143_v41 = vadd.f32 %v3995_v61, %v3885_v55 }
 0x4f7   : > { %v1895_v20 = vadd.f32 %v3934_v9, %v1894_v19  ;;  %v3008_v21 = vpop.f32.mrb[62].mxu1  ;;  %3073 = vmatprep.mubr.msk.bf16.mxu0 %vm718_vm1, %v1953_v16 }
 0x4f8   : > { %v1906_v22 = vadd.f32 %v3008_v21, %v3934_v9  ;;  %v1897_v48 = vpop.f32.mrb[63].mxu1  ;;  %3074 = vmatmul.mubr.msk.bf16.gmra.mrb[56].mxu0 %vm718_vm1, %v1954_v60  ;;  %v1939_v56 = vmax.f32 %v1903_v2, 0.0 }
 0x4f9   : > { %v1898_v59 = vadd.f32 %v3934_v9, %v1897_v48  ;;  %v1937_v26 = vmax.f32 %v1895_v20, 0.0  ;;  %v2135_v9 = vadd.f32 %v3875_v38, %v3995_v61  ;;  %v2154_v20 = vadd.f32 %v3887_v43, %v3995_v61 }
 0x4fa   : > { %v1940_v25 = vmax.f32 %v1906_v22, 0.0  ;;  %v2146_v48 = vadd.f32 %v3995_v61, %v3889_v44 }
 0x4fb   : > { %v1938_v27 = vmax.f32 %v1898_v59, 0.0 }
 0x4fc   : > { %v1956_v28 = vpack.c.bf16 %v1940_v25, %v1939_v56  ;;  %v2167_v25 = vadd.f32 %v3891_v4, %v3995_v61 }
 0x4fd   : > { %v1955_v53 = vpack.c.bf16 %v1938_v27, %v1937_v26 }
 0x4ff   : > { %3077 = vmatprep.mubr.msk.bf16.mxu0 %vm718_vm1, %v1955_v53 }
 0x500   : > { %3078 = vmatmul.mubr.msk.bf16.gmra.mrb[60].mxu0 %vm718_vm1, %v1956_v28  ;;  %v2159_v28 = vadd.f32 %v3995_v61, %v3893_v45 }
 0x59b   : > { %v3051_v31 = vpop.f32.mrb[32].mxu0 }
 0x59c   : > { %v2263_v32 = vadd.f32 %v3051_v31, %v3995_v61  ;;  %v2254_v33 = vpop.f32.mrb[33].mxu0 }
 0x59d   : > { %v2255_v24 = vadd.f32 %v3995_v61, %v2254_v33  ;;  %v3052_v62 = vpop.f32.mrb[34].mxu0 }
 0x59e   : > { %v2384_v10 = vsel %vm2381_vm4, %v2135_v9, %v2263_v32  ;;  %v2266_v18 = vadd.f32 %v3052_v62, %v3995_v61  ;;  %v2257_v38 = vpop.f32.mrb[35].mxu0  ;;  %v2170_v9 = vadd.f32 %v3895_v46, %v3995_v61 }
 0x59f   : > { %2416 = vst.msk [vmem:[%s3219_s25 + $0x10] sm:$0xff] %vm421_vm0, %v2384_v10  ;;  %v2382_v39 = vsel %vm2381_vm4, %v2127_v34, %v2255_v24  ;;  %v2258_v29 = vadd.f32 %v3995_v61, %v2257_v38  ;;  %v2162_v34 = vadd.f32 %v3995_v61, %v3897_v49  ;;  %v2175_v38 = vadd.f32 %v3995_v61, %v3901_v11 }
 0x5a0   : > { %2414 = vst.msk [vmem:[%s3219_s25] sm:$0xff] %vm421_vm0, %v2382_v39  ;;  %v2385_v40 = vsel %vm2381_vm4, %v2138_v37, %v2266_v18  ;;  %v2183_v37 = vadd.f32 %v3899_v50, %v3995_v61 }
 0x5a1   : > { %2417 = vst.msk [vmem:[%s3219_s25 + $0x18] sm:$0xff] %vm421_vm0, %v2385_v40  ;;  %v2383_v13 = vsel %vm2381_vm4, %v2130_v23, %v2258_v29  ;;  %v2186_v29 = vadd.f32 %v3903_v12, %v3995_v61 }
 0x5a2   : > { %2415 = vst.msk [vmem:[%s3219_s25 + $0x8] sm:$0xff] %vm421_vm0, %v2383_v13 }
 0x5a3   : > { %v3055_v63 = vpop.f32.mrb[36].mxu0 }
 0x5a4   : > { %v2279_v60 = vadd.f32 %v3055_v63, %v3995_v61  ;;  %v2270_v16 = vpop.f32.mrb[37].mxu0  ;;  %v2178_v63 = vadd.f32 %v3995_v61, %v3905_v51 }
 0x5a5   : > { %v2271_v2 = vadd.f32 %v3995_v61, %v2270_v16  ;;  %v3056_v19 = vpop.f32.mrb[38].mxu0  ;;  %v2199_v16 = vadd.f32 %v3907_v52, %v3995_v61 }
 0x5a6   : > { %v2388_v21 = vsel %vm2381_vm4, %v2151_v14, %v2279_v60  ;;  %v2282_v22 = vadd.f32 %v3056_v19, %v3995_v61  ;;  %v2273_v3 = vpop.f32.mrb[39].mxu0  ;;  %v2191_v19 = vadd.f32 %v3995_v61, %v3909_v7 }
 0x5a7   : > { %2420 = vst.msk [vmem:[%s3219_s25 + $0x30] sm:$0xff] %vm421_vm0, %v2388_v21  ;;  %v2386_v55 = vsel %vm2381_vm4, %v2143_v41, %v2271_v2  ;;  %v2274_v59 = vadd.f32 %v3995_v61, %v2273_v3 }
 0x5a8   : > { %2418 = vst.msk [vmem:[%s3219_s25 + $0x20] sm:$0xff] %vm421_vm0, %v2386_v55  ;;  %v2389_v43 = vsel %vm2381_vm4, %v2154_v20, %v2282_v22  ;;  %v2202_v22 = vadd.f32 %v3911_v17, %v3995_v61  ;;  %v2194_v55 = vadd.f32 %v3995_v61, %v3913_v57 }
 0x5a9   : > { %2421 = vst.msk [vmem:[%s3219_s25 + $0x38] sm:$0xff] %vm421_vm0, %v2389_v43  ;;  %v2387_v56 = vsel %vm2381_vm4, %v2146_v48, %v2274_v59 }
 0x5aa   : > { %2419 = vst.msk [vmem:[%s3219_s25 + $0x28] sm:$0xff] %vm421_vm0, %v2387_v56  ;;  %v2215_v56 = vadd.f32 %v3915_v58, %v3995_v61 }
 0x5ab   : > { %v3059_v44 = vpop.f32.mrb[40].mxu0 }
 0x5ac   : > { %v2295_v26 = vadd.f32 %v3059_v44, %v3995_v61  ;;  %v2286_v27 = vpop.f32.mrb[41].mxu0 }
 0x5ad   : > { %v2287_v53 = vadd.f32 %v3995_v61, %v2286_v27  ;;  %v3060_v31 = vpop.f32.mrb[42].mxu0 }
 0x5ae   : > { %v2392_v32 = vsel %vm2381_vm4, %v2167_v25, %v2295_v26  ;;  %v2298_v33 = vadd.f32 %v3060_v31, %v3995_v61  ;;  %v2289_v4 = vpop.f32.mrb[43].mxu0  ;;  %v2207_v26 = vadd.f32 %v3995_v61, %v3917_v30 }
 0x5af   : > { %2424 = vst.msk [vmem:[%s3219_s25 + $0x50] sm:$0xff] %vm421_vm0, %v2392_v32  ;;  %v2390_v45 = vsel %vm2381_vm4, %v2159_v28, %v2287_v53  ;;  %v2290_v24 = vadd.f32 %v3995_v61, %v2289_v4  ;;  %v2218_v53 = vadd.f32 %v3919_v35, %v3995_v61  ;;  %v2210_v32 = vadd.f32 %v3995_v61, %v3921_v42 }
 0x5b0   : > { %2422 = vst.msk [vmem:[%s3219_s25 + $0x40] sm:$0xff] %vm421_vm0, %v2390_v45  ;;  %v2393_v46 = vsel %vm2381_vm4, %v2170_v9, %v2298_v33 }
 0x5b1   : > { %2425 = vst.msk [vmem:[%s3219_s25 + $0x58] sm:$0xff] %vm421_vm0, %v2393_v46  ;;  %v2391_v62 = vsel %vm2381_vm4, %v2162_v34, %v2290_v24  ;;  %v2231_v34 = vadd.f32 %v3923_v5, %v3995_v61  ;;  %v2223_v46 = vadd.f32 %v3995_v61, %v3925_v1 }
 0x5b2   : > { %2423 = vst.msk [vmem:[%s3219_s25 + $0x48] sm:$0xff] %vm421_vm0, %v2391_v62 }
 0x5b3   : > { %v3063_v49 = vpop.f32.mrb[44].mxu0 }
 0x5b4   : > { %v2311_v10 = vadd.f32 %v3063_v49, %v3995_v61  ;;  %v2302_v18 = vpop.f32.mrb[45].mxu0 }
 0x5b5   : > { %v2303_v23 = vadd.f32 %v3995_v61, %v2302_v18  ;;  %v3064_v39 = vpop.f32.mrb[46].mxu0 }
 0x5b6   : > { %v2396_v40 = vsel %vm2381_vm4, %v2183_v37, %v2311_v10  ;;  %v2314_v13 = vadd.f32 %v3064_v39, %v3995_v61  ;;  %v2305_v50 = vpop.f32.mrb[47].mxu0  ;;  %v2234_v37 = vadd.f32 %v3927_v6, %v3995_v61 }
 0x5b7   : > { %2428 = vst.msk [vmem:[%s3219_s25 + $0x70] sm:$0xff] %vm421_vm0, %v2396_v40  ;;  %v2394_v11 = vsel %vm2381_vm4, %v2175_v38, %v2303_v23  ;;  %v2306_v14 = vadd.f32 %v3995_v61, %v2305_v50  ;;  %v2226_v38 = vadd.f32 %v3995_v61, %v3929_v8  ;;  %v2239_v50 = vadd.f32 %v3995_v61, %v3941_v15 }
 0x5b8   : > { %2426 = vst.msk [vmem:[%s3219_s25 + $0x60] sm:$0xff] %vm421_vm0, %v2394_v11  ;;  %v2397_v12 = vsel %vm2381_vm4, %v2186_v29, %v2314_v13  ;;  %v2247_v29 = vadd.f32 %v3938_v0, %v3995_v61 }
 0x5b9   : > { %2429 = vst.msk [vmem:[%s3219_s25 + $0x78] sm:$0xff] %vm421_vm0, %v2397_v12  ;;  %v2395_v60 = vsel %vm2381_vm4, %v2178_v63, %v2306_v14  ;;  %v2250_v14 = vadd.f32 %v3944_v54, %v3995_v61 }
 0x5ba   : > { %2427 = vst.msk [vmem:[%s3219_s25 + $0x68] sm:$0xff] %vm421_vm0, %v2395_v60 }
 0x5bb   : > { %v3067_v51 = vpop.f32.mrb[48].mxu0 }
 0x5bc   : > { %v2327_v41 = vadd.f32 %v3067_v51, %v3995_v61  ;;  %v2318_v2 = vpop.f32.mrb[49].mxu0  ;;  %v2242_v51 = vadd.f32 %v3995_v61, %v3946_v47 }
 0x5bd   : > { %v2319_v20 = vadd.f32 %v3995_v61, %v2318_v2  ;;  %v3068_v21 = vpop.f32.mrb[50].mxu0 }
 0x5be   : > { %v2400_v3 = vsel %vm2381_vm4, %v2199_v16, %v2327_v41  ;;  %v2330_v48 = vadd.f32 %v3068_v21, %v3995_v61  ;;  %v2321_v52 = vpop.f32.mrb[51].mxu0 }
 0x5bf   : > { %2432 = vst.msk [vmem:[%s3219_s25 + $0x90] sm:$0xff] %vm421_vm0, %v2400_v3  ;;  %v2398_v7 = vsel %vm2381_vm4, %v2191_v19, %v2319_v20  ;;  %v2322_v59 = vadd.f32 %v3995_v61, %v2321_v52 }
 0x5c0   : > { %2430 = vst.msk [vmem:[%s3219_s25 + $0x80] sm:$0xff] %vm421_vm0, %v2398_v7  ;;  %v2401_v17 = vsel %vm2381_vm4, %v2202_v22, %v2330_v48 }
 0x5c1   : > { %2433 = vst.msk [vmem:[%s3219_s25 + $0x98] sm:$0xff] %vm421_vm0, %v2401_v17  ;;  %v2399_v43 = vsel %vm2381_vm4, %v2194_v55, %v2322_v59 }
 0x5c2   : > { %2431 = vst.msk [vmem:[%s3219_s25 + $0x88] sm:$0xff] %vm421_vm0, %v2399_v43 }
 0x5c3   : > { %v3071_v57 = vpop.f32.mrb[52].mxu0 }
 0x5c4   : > { %v2343_v44 = vadd.f32 %v3071_v57, %v3995_v61  ;;  %v2334_v25 = vpop.f32.mrb[53].mxu0 }
 0x5c5   : > { %v2335_v27 = vadd.f32 %v3995_v61, %v2334_v25  ;;  %v3072_v28 = vpop.f32.mrb[54].mxu0 }
 0x5c6   : > { %v2404_v31 = vsel %vm2381_vm4, %v2215_v56, %v2343_v44  ;;  %v2346_v9 = vadd.f32 %v3072_v28, %v3995_v61  ;;  %v2337_v58 = vpop.f32.mrb[55].mxu0 }
 0x5c7   : > { %2436 = vst.msk [vmem:[%s3219_s25 + $0xb0] sm:$0xff] %vm421_vm0, %v2404_v31  ;;  %v2402_v30 = vsel %vm2381_vm4, %v2207_v26, %v2335_v27  ;;  %v2338_v33 = vadd.f32 %v3995_v61, %v2337_v58 }
 0x5c8   : > { %2434 = vst.msk [vmem:[%s3219_s25 + $0xa0] sm:$0xff] %vm421_vm0, %v2402_v30  ;;  %v2405_v35 = vsel %vm2381_vm4, %v2218_v53, %v2346_v9 }
 0x5c9   : > { %2437 = vst.msk [vmem:[%s3219_s25 + $0xb8] sm:$0xff] %vm421_vm0, %v2405_v35  ;;  %v2403_v4 = vsel %vm2381_vm4, %v2210_v32, %v2338_v33 }
 0x5ca   : > { %2435 = vst.msk [vmem:[%s3219_s25 + $0xa8] sm:$0xff] %vm421_vm0, %v2403_v4 }
 0x5cb   : > { %v3075_v42 = vpop.f32.mrb[56].mxu0 }
 0x5cc   : > { %v2359_v45 = vadd.f32 %v3075_v42, %v3995_v61  ;;  %v2350_v24 = vpop.f32.mrb[57].mxu0 }
 0x5cd   : > { %v2351_v62 = vadd.f32 %v3995_v61, %v2350_v24  ;;  %v3076_v49 = vpop.f32.mrb[58].mxu0 }
 0x5ce   : > { %v2408_v10 = vsel %vm2381_vm4, %v2231_v34, %v2359_v45  ;;  %v2362_v18 = vadd.f32 %v3076_v49, %v3995_v61  ;;  %v2353_v5 = vpop.f32.mrb[59].mxu0 }
 0x5cf   : > { %2440 = vst.msk [vmem:[%s3219_s25 + $0xd0] sm:$0xff] %vm421_vm0, %v2408_v10  ;;  %v2406_v1 = vsel %vm2381_vm4, %v2223_v46, %v2351_v62  ;;  %v2354_v23 = vadd.f32 %v3995_v61, %v2353_v5 }
 0x5d0   : > { %2438 = vst.msk [vmem:[%s3219_s25 + $0xc0] sm:$0xff] %vm421_vm0, %v2406_v1  ;;  %v2409_v6 = vsel %vm2381_vm4, %v2234_v37, %v2362_v18 }
 0x5d1   : > { %2441 = vst.msk [vmem:[%s3219_s25 + $0xd8] sm:$0xff] %vm421_vm0, %v2409_v6  ;;  %v2407_v39 = vsel %vm2381_vm4, %v2226_v38, %v2354_v23 }
 0x5d2   : > { %2439 = vst.msk [vmem:[%s3219_s25 + $0xc8] sm:$0xff] %vm421_vm0, %v2407_v39 }
 0x5d3   : > { %v3079_v8 = vpop.f32.mrb[60].mxu0 }
 0x5d4   : > { %v2375_v40 = vadd.f32 %v3079_v8, %v3995_v61  ;;  %v2366_v13 = vpop.f32.mrb[61].mxu0 }
 0x5d5   : > { %v2367_v63 = vadd.f32 %v3995_v61, %v2366_v13  ;;  %v3080_v11 = vpop.f32.mrb[62].mxu0 }
 0x5d6   : > { %v2412_v12 = vsel %vm2381_vm4, %v2247_v29, %v2375_v40  ;;  %v2378_v60 = vadd.f32 %v3080_v11, %v3995_v61  ;;  %v2369_v0 = vpop.f32.mrb[63].mxu0 }
 0x5d7   : > { %2444 = vst.msk [vmem:[%s3219_s25 + $0xf0] sm:$0xff] %vm421_vm0, %v2412_v12  ;;  %v2410_v15 = vsel %vm2381_vm4, %v2239_v50, %v2367_v63  ;;  %v2370_v16 = vadd.f32 %v3995_v61, %v2369_v0 }
 0x5d8   : > { %2442 = vst.msk [vmem:[%s3219_s25 + $0xe0] sm:$0xff] %vm421_vm0, %v2410_v15  ;;  %v2413_v54 = vsel %vm2381_vm4, %v2250_v14, %v2378_v60 }
 0x5d9   : > { %2445 = vst.msk [vmem:[%s3219_s25 + $0xf8] sm:$0xff] %vm421_vm0, %v2413_v54  ;;  %v2411_v41 = vsel %vm2381_vm4, %v2242_v51, %v2370_v16 }
 0x5da   : > { %2443 = vst.msk [vmem:[%s3219_s25 + $0xe8] sm:$0xff] %vm421_vm0, %v2411_v41 }
 0x5db PF: > { %s19_s29 = sadd.s32 1, %s3139_s29  }
 0x5dc   : > { %p16_p6 = scmp.ge.s32.totalorder %s19_s29, 4  }
 0x5de   :  { %18 = sbr.rel (!%p16_p6) target bundleno = 2 (0x2), region = 86 }

</bundles_post_ra>
